<compile_context>
chip_gen: v7x
topology: tpu7x:2x2x1
jax: 0.10.0
libtpu: 0.0.40
codegen_flags: <defaults>
</compile_context>

<pallas_src>
import numpy as np
import jax
import jax.numpy as jnp
from jax.experimental import pallas as pl
from jax.experimental.pallas import tpu as pltpu

BN_EPS = 1e-5


# ------------------------------- kernel ---------------------------------------
def _sigmoid(x):
    # logistic = 1 / (1 + exp(-x)): exp + approx reciprocal both run on the EUP
    # slot, off the VALU / MXU critical path.
    return pl.reciprocal(1.0 + jnp.exp(-x), approx=True)


def _net_kernel(x_ref, w1_ref, b1_ref, w2_ref, b2_ref, w3_ref, b3_ref,
                w4_ref, b4_ref, wl_ref, bl_ref, o_ref):
    # x_ref: (tb, 12) f32.  The first dot contracts the feature axis of BOTH
    # operands (A @ B^T), so batch lands on the lane axis of h and stays there.
    xb = x_ref[...].astype(jnp.bfloat16)

    # layer1: fused Conv1d(2->8,k3,p1)+BN -> (48, tb)
    z = jax.lax.dot_general(w1_ref[...], xb, (((1,), (1,)), ((), ())),
                            preferred_element_type=jnp.float32)
    h = _sigmoid(z + b1_ref[...])

    def layer(h, w_ref, b_ref):
        z = jnp.dot(w_ref[...], h.astype(jnp.bfloat16),
                    preferred_element_type=jnp.float32)
        return _sigmoid(z + b_ref[...])

    # layer2: fused Conv1d(8->32,k2)+BN  -> (160, tb)   (Dropout = identity, eval)
    h = layer(h, w2_ref, b2_ref)
    # layer3: fused Conv1d(32->64,k3)+BN -> (192, tb)   (Dropout = identity, eval)
    h = layer(h, w3_ref, b3_ref)
    # layer4: fused Conv1d(64->128,k3)+BN -> (128, tb)  (== flatten(1), T_out=1)
    h = layer(h, w4_ref, b4_ref)

    # Linear(128 -> 1): elementwise mul + sublane reduce -> lane-dense (1, tb).
    o_ref[...] = jnp.sum(h * wl_ref[...], axis=0, keepdims=True) + bl_ref[...]


# ------------------------------- wrapper ---------------------------------------
def _round_up(x, m):
    return (x + m - 1) // m * m


def _choose_tiling(batch, max_tb):
    """Pick (tile_cols, num_steps) for the lane/batch axis.

    * pad batch to a multiple of 128 lanes (full vregs, unmasked stores)
    * >= 2 grid steps when padded batch >= 256 (v7x megacore, DMA pipelining)
    * tile capped at max_tb columns (VMEM safety), large enough to amortize
      the ~0.35us fixed per-step overhead.
    """
    bp = _round_up(batch, 128)
    nsteps = pl.cdiv(bp, max_tb)
    if bp >= 256:
        nsteps = max(nsteps, 2)
    tb = _round_up(pl.cdiv(bp, nsteps), 128)
    return tb, nsteps


def net_forward(x, folded_params, *, max_tb=4096):
    B = x.shape[0]
    tb, nsteps = _choose_tiling(B, max_tb)
    b_pad = tb * nsteps
    x_p = x if b_pad == B else jnp.pad(x, ((0, b_pad - B), (0, 0)))

    def full_spec(a):
        return pl.BlockSpec(a.shape, lambda i: (0,) * a.ndim)

    out = pl.pallas_call(
        _net_kernel,
        out_shape=jax.ShapeDtypeStruct((1, b_pad), jnp.float32),
        grid_spec=pltpu.PrefetchScalarGridSpec(
            num_scalar_prefetch=0,
            grid=(nsteps,),
            in_specs=[pl.BlockSpec((tb, 12), lambda i: (i, 0))]
                     + [full_spec(p) for p in folded_params],
            out_specs=pl.BlockSpec((1, tb), lambda i: (0, i)),
        ),
        compiler_params=pltpu.CompilerParams(
            dimension_semantics=("parallel",),
            vmem_limit_bytes=48 * 1024 * 1024),
        cost_estimate=pl.CostEstimate(
            flops=127_360 * b_pad,            # 2*(48*12+160*48+192*160+128*192)+2*128 per sample
            transcendentals=528 * b_pad,      # 48+160+192+128 sigmoids per sample
            bytes_accessed=52 * b_pad + 140_000),
    )(x_p, *folded_params)
    return out[:, :B].reshape(B, 1)


# --------------------------- parameter setup -----------------------------------
def _conv_layer_params(key, cout, cin, k):
    k1, k2, k3, k4 = jax.random.split(key, 4)
    bound = 1.0 / float(cin * k) ** 0.5
    w = jax.random.uniform(k1, (cout, cin, k), jnp.float32, -bound, bound)
    b = jax.random.uniform(k2, (cout,), jnp.float32, -bound, bound)
    gamma = jax.random.uniform(k3, (cout,), jnp.float32, 0.5, 1.5)
    beta = jax.random.uniform(k4, (cout,), jnp.float32, -0.5, 0.5)
    mean = jnp.zeros((cout,), jnp.float32)
    var = jnp.ones((cout,), jnp.float32)
    return (w, b, gamma, beta, mean, var)


def _fuse_conv_bn(p, t_in, pad, channel_major_in=False):
    """Fold eval-mode BN into the conv and build one fused matmul weight.

    Output feature layout (rows): [t_out * Cout + c_out].
    Input feature layout (cols):  [c_in * t_in + t] if channel_major_in
                                  (layer1's x.view(B,2,6) flattening),
                                  else [t * Cin + c_in] (our layer outputs).
    Returns (W, bias) with W: (T_out*Cout, Cin*T_in), bias: (T_out*Cout, 1).
    """
    w, b, gamma, beta, mean, var = [np.asarray(t, dtype=np.float32) for t in p]
    scale = gamma / np.sqrt(var + np.float32(BN_EPS))
    w_eff = w * scale[:, None, None]                       # (Cout, Cin, K)
    b_eff = (b - mean) * scale + beta                      # (Cout,)
    cout, cin, K = w.shape
    t_out_n = t_in + 2 * pad - K + 1

    W = np.zeros((t_out_n * cout, cin * t_in), dtype=np.float32)
    for t_out in range(t_out_n):
        rows = slice(t_out * cout, (t_out + 1) * cout)
        for k in range(K):
            ti = t_out + k - pad
            if 0 <= ti < t_in:
                if channel_major_in:
                    W[rows, ti::t_in] = w_eff[:, :, k]     # cols c_in*t_in + ti
                else:
                    W[rows, ti * cin:(ti + 1) * cin] = w_eff[:, :, k]
    bias = np.tile(b_eff, t_out_n).reshape(t_out_n * cout, 1).astype(np.float32)
    return jnp.asarray(W), jnp.asarray(bias)


def init_params(key):
    ks = jax.random.split(key, 6)
    p1 = _conv_layer_params(ks[0], 8, 2, 3)      # Conv1d(2->8,  k=3, pad=1)
    p2 = _conv_layer_params(ks[1], 32, 8, 2)     # Conv1d(8->32, k=2)
    p3 = _conv_layer_params(ks[2], 64, 32, 3)    # Conv1d(32->64, k=3)
    p4 = _conv_layer_params(ks[3], 128, 64, 3)   # Conv1d(64->128, k=3)
    bound = 1.0 / 128.0 ** 0.5
    wl_raw = jax.random.uniform(ks[4], (1, 128), jnp.float32, -bound, bound)
    bl_raw = jax.random.uniform(ks[5], (1,), jnp.float32, -bound, bound)
    raw = (p1, p2, p3, p4, wl_raw, bl_raw)

    w1, b1 = _fuse_conv_bn(p1, t_in=6, pad=1, channel_major_in=True)  # (48,12)
    w2, b2 = _fuse_conv_bn(p2, t_in=6, pad=0)                         # (160,48)
    w3, b3 = _fuse_conv_bn(p3, t_in=5, pad=0)                         # (192,160)
    w4, b4 = _fuse_conv_bn(p4, t_in=3, pad=0)                         # (128,192)
    # Matmul weights in bf16 (f32 accumulation in-kernel); bias/linear stay f32.
    folded = (w1.astype(jnp.bfloat16), b1,
              w2.astype(jnp.bfloat16), b2,
              w3.astype(jnp.bfloat16), b3,
              w4.astype(jnp.bfloat16), b4,
              wl_raw.T,                 # (128, 1) for the sublane-reduce linear
              bl_raw.reshape(1, 1))
    return raw, folded


# --------------------------- pure-JAX reference ---------------------------------
def reference_forward(x, raw):
    p1, p2, p3, p4, wl_raw, bl_raw = raw
    h = x.reshape(x.shape[0], 2, 6)

    def block(h, p, pad):
        w, b, g, bt, m, v = p
        out = jax.lax.conv_general_dilated(
            h, w, window_strides=(1,), padding=[(pad, pad)],
            dimension_numbers=('NCH', 'OIH', 'NCH'))
        out = out + b[None, :, None]
        out = (out - m[None, :, None]) / jnp.sqrt(v[None, :, None] + BN_EPS)
        out = g[None, :, None] * out + bt[None, :, None]
        return jax.nn.sigmoid(out)

    h = block(h, p1, 1)
    h = block(h, p2, 0)
    h = block(h, p3, 0)
    h = block(h, p4, 0)
    h = h.reshape(h.shape[0], -1)                 # (B, 128)
    return h @ wl_raw.T + bl_raw[None, :]


if __name__ == "__main__":
    key = jax.random.PRNGKey(0)
    kx, kp = jax.random.split(key)
    B = 16
    x = jax.random.normal(kx, (B, 12), dtype=jnp.float32)

    raw, folded = init_params(kp)

    out = jax.block_until_ready(net_forward(x, folded))
    ref = jax.block_until_ready(reference_forward(x, raw))

    assert out.shape == (B, 1)
    # bf16 matmuls + approx-reciprocal sigmoid vs. pure-f32 reference.
    assert jnp.allclose(out, ref, atol=5e-2, rtol=5e-2), (
        f"mismatch: max abs err {jnp.max(jnp.abs(out - ref))}")
    print("KERNEL_OK")
</pallas_src>

<mosaic_0001>
module attributes {stable_mosaic.version = 11 : i64} {
  func.func @_net_kernel(%arg0: i32, %arg1: memref<128x12xf32, #tpu.memory_space<vmem>>, %arg2: memref<48x12xbf16, #tpu.memory_space<vmem>>, %arg3: memref<48x1xf32, #tpu.memory_space<vmem>>, %arg4: memref<160x48xbf16, #tpu.memory_space<vmem>>, %arg5: memref<160x1xf32, #tpu.memory_space<vmem>>, %arg6: memref<192x160xbf16, #tpu.memory_space<vmem>>, %arg7: memref<192x1xf32, #tpu.memory_space<vmem>>, %arg8: memref<128x192xbf16, #tpu.memory_space<vmem>>, %arg9: memref<128x1xf32, #tpu.memory_space<vmem>>, %arg10: memref<128x1xf32, #tpu.memory_space<vmem>>, %arg11: memref<1x1xf32, #tpu.memory_space<vmem>>, %arg12: memref<1x128xf32, #tpu.memory_space<vmem>>) attributes {dimension_semantics = [#tpu.dimension_semantics<parallel>], iteration_bounds = array<i64: 1>, scalar_prefetch = 0 : i64, scratch_operands = 0 : i64, tpu.core_type = #tpu.core_type<tc>, window_params = [{transform_indices = @transform_0, window_bounds = array<i64: 128, 12>}, {pipeline_mode = #tpu.pipeline_mode<synchronous>, transform_indices = @transform_1, window_bounds = array<i64: 48, 12>}, {pipeline_mode = #tpu.pipeline_mode<synchronous>, transform_indices = @transform_2, window_bounds = array<i64: 48, 1>}, {pipeline_mode = #tpu.pipeline_mode<synchronous>, transform_indices = @transform_3, window_bounds = array<i64: 160, 48>}, {pipeline_mode = #tpu.pipeline_mode<synchronous>, transform_indices = @transform_4, window_bounds = array<i64: 160, 1>}, {pipeline_mode = #tpu.pipeline_mode<synchronous>, transform_indices = @transform_5, window_bounds = array<i64: 192, 160>}, {pipeline_mode = #tpu.pipeline_mode<synchronous>, transform_indices = @transform_6, window_bounds = array<i64: 192, 1>}, {pipeline_mode = #tpu.pipeline_mode<synchronous>, transform_indices = @transform_7, window_bounds = array<i64: 128, 192>}, {pipeline_mode = #tpu.pipeline_mode<synchronous>, transform_indices = @transform_8, window_bounds = array<i64: 128, 1>}, {pipeline_mode = #tpu.pipeline_mode<synchronous>, transform_indices = @transform_9, window_bounds = array<i64: 128, 1>}, {pipeline_mode = #tpu.pipeline_mode<synchronous>, transform_indices = @transform_10, window_bounds = array<i64: 1, 1>}, {transform_indices = @transform_11, window_bounds = array<i64: 1, 128>}]} {
    %c0 = arith.constant 0 : index
    %c0_0 = arith.constant 0 : index
    %0 = vector.load %arg1[%c0, %c0_0] : memref<128x12xf32, #tpu.memory_space<vmem>>, vector<128x12xf32>
    %1 = arith.truncf %0 : vector<128x12xf32> to vector<128x12xbf16>
    %c0_1 = arith.constant 0 : index
    %c0_2 = arith.constant 0 : index
    %2 = vector.load %arg2[%c0_1, %c0_2] : memref<48x12xbf16, #tpu.memory_space<vmem>>, vector<48x12xbf16>
    %cst = arith.constant dense<0.000000e+00> : vector<48x128xf32>
    %3 = tpu.matmul %2, %1, %cst {dimension_numbers = #tpu.dot_dimension_numbers<[1], [1], [0], [0], [0, 0, 1, 0], [], []>} : vector<48x12xbf16>, vector<128x12xbf16>, vector<48x128xf32> -> vector<48x128xf32>
    %c0_3 = arith.constant 0 : index
    %c0_4 = arith.constant 0 : index
    %4 = vector.load %arg3[%c0_3, %c0_4] : memref<48x1xf32, #tpu.memory_space<vmem>>, vector<48x1xf32>
    %5 = vector.broadcast %4 : vector<48x1xf32> to vector<48x128xf32>
    %6 = arith.addf %3, %5 : vector<48x128xf32>
    %cst_5 = arith.constant 0.000000e+00 : f32
    %7 = vector.broadcast %cst_5 : f32 to vector<48x128xf32>
    %8 = arith.subf %7, %6 : vector<48x128xf32>
    %9 = math.exp %8 : vector<48x128xf32>
    %cst_6 = arith.constant 1.000000e+00 : f32
    %10 = vector.broadcast %cst_6 : f32 to vector<48x128xf32>
    %11 = arith.addf %10, %9 : vector<48x128xf32>
    %12 = tpu.reciprocal %11 {approx = true} : vector<48x128xf32> -> vector<48x128xf32>
    %c0_7 = arith.constant 0 : index
    %c0_8 = arith.constant 0 : index
    %13 = vector.load %arg4[%c0_7, %c0_8] : memref<160x48xbf16, #tpu.memory_space<vmem>>, vector<160x48xbf16>
    %14 = arith.truncf %12 : vector<48x128xf32> to vector<48x128xbf16>
    %cst_9 = arith.constant dense<0.000000e+00> : vector<160x128xf32>
    %15 = tpu.matmul %13, %14, %cst_9 {dimension_numbers = #tpu.dot_dimension_numbers<[1], [0], [0], [1], [0, 0, 1, 1], [], []>} : vector<160x48xbf16>, vector<48x128xbf16>, vector<160x128xf32> -> vector<160x128xf32>
    %c0_10 = arith.constant 0 : index
    %c0_11 = arith.constant 0 : index
    %16 = vector.load %arg5[%c0_10, %c0_11] : memref<160x1xf32, #tpu.memory_space<vmem>>, vector<160x1xf32>
    %17 = vector.broadcast %16 : vector<160x1xf32> to vector<160x128xf32>
    %18 = arith.addf %15, %17 : vector<160x128xf32>
    %cst_12 = arith.constant 0.000000e+00 : f32
    %19 = vector.broadcast %cst_12 : f32 to vector<160x128xf32>
    %20 = arith.subf %19, %18 : vector<160x128xf32>
    %21 = math.exp %20 : vector<160x128xf32>
    %cst_13 = arith.constant 1.000000e+00 : f32
    %22 = vector.broadcast %cst_13 : f32 to vector<160x128xf32>
    %23 = arith.addf %22, %21 : vector<160x128xf32>
    %24 = tpu.reciprocal %23 {approx = true} : vector<160x128xf32> -> vector<160x128xf32>
    %c0_14 = arith.constant 0 : index
    %c0_15 = arith.constant 0 : index
    %25 = vector.load %arg6[%c0_14, %c0_15] : memref<192x160xbf16, #tpu.memory_space<vmem>>, vector<192x160xbf16>
    %26 = arith.truncf %24 : vector<160x128xf32> to vector<160x128xbf16>
    %cst_16 = arith.constant dense<0.000000e+00> : vector<192x128xf32>
    %27 = tpu.matmul %25, %26, %cst_16 {dimension_numbers = #tpu.dot_dimension_numbers<[1], [0], [0], [1], [0, 0, 1, 1], [], []>} : vector<192x160xbf16>, vector<160x128xbf16>, vector<192x128xf32> -> vector<192x128xf32>
    %c0_17 = arith.constant 0 : index
    %c0_18 = arith.constant 0 : index
    %28 = vector.load %arg7[%c0_17, %c0_18] : memref<192x1xf32, #tpu.memory_space<vmem>>, vector<192x1xf32>
    %29 = vector.broadcast %28 : vector<192x1xf32> to vector<192x128xf32>
    %30 = arith.addf %27, %29 : vector<192x128xf32>
    %cst_19 = arith.constant 0.000000e+00 : f32
    %31 = vector.broadcast %cst_19 : f32 to vector<192x128xf32>
    %32 = arith.subf %31, %30 : vector<192x128xf32>
    %33 = math.exp %32 : vector<192x128xf32>
    %cst_20 = arith.constant 1.000000e+00 : f32
    %34 = vector.broadcast %cst_20 : f32 to vector<192x128xf32>
    %35 = arith.addf %34, %33 : vector<192x128xf32>
    %36 = tpu.reciprocal %35 {approx = true} : vector<192x128xf32> -> vector<192x128xf32>
    %c0_21 = arith.constant 0 : index
    %c0_22 = arith.constant 0 : index
    %37 = vector.load %arg8[%c0_21, %c0_22] : memref<128x192xbf16, #tpu.memory_space<vmem>>, vector<128x192xbf16>
    %38 = arith.truncf %36 : vector<192x128xf32> to vector<192x128xbf16>
    %cst_23 = arith.constant dense<0.000000e+00> : vector<128x128xf32>
    %39 = tpu.matmul %37, %38, %cst_23 {dimension_numbers = #tpu.dot_dimension_numbers<[1], [0], [0], [1], [0, 0, 1, 1], [], []>} : vector<128x192xbf16>, vector<192x128xbf16>, vector<128x128xf32> -> vector<128x128xf32>
    %c0_24 = arith.constant 0 : index
    %c0_25 = arith.constant 0 : index
    %40 = vector.load %arg9[%c0_24, %c0_25] : memref<128x1xf32, #tpu.memory_space<vmem>>, vector<128x1xf32>
    %41 = vector.broadcast %40 : vector<128x1xf32> to vector<128x128xf32>
    %42 = arith.addf %39, %41 : vector<128x128xf32>
    %cst_26 = arith.constant 0.000000e+00 : f32
    %43 = vector.broadcast %cst_26 : f32 to vector<128x128xf32>
    %44 = arith.subf %43, %42 : vector<128x128xf32>
    %45 = math.exp %44 : vector<128x128xf32>
    %cst_27 = arith.constant 1.000000e+00 : f32
    %46 = vector.broadcast %cst_27 : f32 to vector<128x128xf32>
    %47 = arith.addf %46, %45 : vector<128x128xf32>
    %48 = tpu.reciprocal %47 {approx = true} : vector<128x128xf32> -> vector<128x128xf32>
    %c0_28 = arith.constant 0 : index
    %c0_29 = arith.constant 0 : index
    %49 = vector.load %arg10[%c0_28, %c0_29] : memref<128x1xf32, #tpu.memory_space<vmem>>, vector<128x1xf32>
    %50 = vector.broadcast %49 : vector<128x1xf32> to vector<128x128xf32>
    %51 = arith.mulf %48, %50 : vector<128x128xf32>
    %cst_30 = arith.constant dense<0.000000e+00> : vector<128xf32>
    %52 = vector.multi_reduction <add>, %51, %cst_30 [0] : vector<128x128xf32> to vector<128xf32>
    %53 = vector.shape_cast %52 : vector<128xf32> to vector<1x128xf32>
    %c0_31 = arith.constant 0 : index
    %c0_32 = arith.constant 0 : index
    %54 = vector.load %arg11[%c0_31, %c0_32] : memref<1x1xf32, #tpu.memory_space<vmem>>, vector<1x1xf32>
    %55 = vector.broadcast %54 : vector<1x1xf32> to vector<1x128xf32>
    %56 = arith.addf %53, %55 : vector<1x128xf32>
    %c0_33 = arith.constant 0 : index
    %c0_34 = arith.constant 0 : index
    %57 = vector.load %arg12[%c0_33, %c0_34] : memref<1x128xf32, #tpu.memory_space<vmem>>, vector<1x128xf32>
    tpu.vector_store %arg12[%c0_33, %c0_34], %56 {strides = array<i32>} : memref<1x128xf32, #tpu.memory_space<vmem>>, vector<1x128xf32>,
    return
  }
  func.func @transform_0(%arg0: i32) -> (i32, i32) {
    %c0_i32 = arith.constant 0 : i32
    %c0_i32_0 = arith.constant 0 : i32
    return %arg0, %c0_i32 : i32, i32
  }
  func.func @transform_1(%arg0: i32) -> (i32, i32) {
    %c0_i32 = arith.constant 0 : i32
    %c0_i32_0 = arith.constant 0 : i32
    %c0_i32_1 = arith.constant 0 : i32
    return %c0_i32, %c0_i32_0 : i32, i32
  }
  func.func @transform_2(%arg0: i32) -> (i32, i32) {
    %c0_i32 = arith.constant 0 : i32
    %c0_i32_0 = arith.constant 0 : i32
    %c0_i32_1 = arith.constant 0 : i32
    return %c0_i32, %c0_i32_0 : i32, i32
  }
  func.func @transform_3(%arg0: i32) -> (i32, i32) {
    %c0_i32 = arith.constant 0 : i32
    %c0_i32_0 = arith.constant 0 : i32
    %c0_i32_1 = arith.constant 0 : i32
    return %c0_i32, %c0_i32_0 : i32, i32
  }
  func.func @transform_4(%arg0: i32) -> (i32, i32) {
    %c0_i32 = arith.constant 0 : i32
    %c0_i32_0 = arith.constant 0 : i32
    %c0_i32_1 = arith.constant 0 : i32
    return %c0_i32, %c0_i32_0 : i32, i32
  }
  func.func @transform_5(%arg0: i32) -> (i32, i32) {
    %c0_i32 = arith.constant 0 : i32
    %c0_i32_0 = arith.constant 0 : i32
    %c0_i32_1 = arith.constant 0 : i32
    return %c0_i32, %c0_i32_0 : i32, i32
  }
  func.func @transform_6(%arg0: i32) -> (i32, i32) {
    %c0_i32 = arith.constant 0 : i32
    %c0_i32_0 = arith.constant 0 : i32
    %c0_i32_1 = arith.constant 0 : i32
    return %c0_i32, %c0_i32_0 : i32, i32
  }
  func.func @transform_7(%arg0: i32) -> (i32, i32) {
    %c0_i32 = arith.constant 0 : i32
    %c0_i32_0 = arith.constant 0 : i32
    %c0_i32_1 = arith.constant 0 : i32
    return %c0_i32, %c0_i32_0 : i32, i32
  }
  func.func @transform_8(%arg0: i32) -> (i32, i32) {
    %c0_i32 = arith.constant 0 : i32
    %c0_i32_0 = arith.constant 0 : i32
    %c0_i32_1 = arith.constant 0 : i32
    return %c0_i32, %c0_i32_0 : i32, i32
  }
  func.func @transform_9(%arg0: i32) -> (i32, i32) {
    %c0_i32 = arith.constant 0 : i32
    %c0_i32_0 = arith.constant 0 : i32
    %c0_i32_1 = arith.constant 0 : i32
    return %c0_i32, %c0_i32_0 : i32, i32
  }
  func.func @transform_10(%arg0: i32) -> (i32, i32) {
    %c0_i32 = arith.constant 0 : i32
    %c0_i32_0 = arith.constant 0 : i32
    %c0_i32_1 = arith.constant 0 : i32
    return %c0_i32, %c0_i32_0 : i32, i32
  }
  func.func @transform_11(%arg0: i32) -> (i32, i32) {
    %c0_i32 = arith.constant 0 : i32
    %c0_i32_0 = arith.constant 0 : i32
    return %c0_i32, %arg0 : i32, i32
  }
}

</mosaic_0001>

<bundles_post_ra>
// kernel: tpu_custom_call.1
= control target key start
LH: loop header
LB: loop body
LE: loop exit
PB: predicated region body
PF: predicated region fallthrough
CT: control target
= control target key end

     0   :  { %s3015_s0 = inlined_call_operand.vmem [shape: f32[128,12], index: 0, kind: input, shape index: {}]   ;;  %s3016_s1 = inlined_call_operand.vmem [shape: bf16[48,12], index: 1, kind: input, shape index: {}]   ;;  %s3017_s2 = inlined_call_operand.vmem [shape: f32[48,1], index: 2, kind: input, shape index: {}]   ;;  %s3018_s3 = inlined_call_operand.vmem [shape: bf16[160,48], index: 3, kind: input, shape index: {}]   ;;  %s3019_s4 = inlined_call_operand.vmem [shape: f32[160,1], index: 4, kind: input, shape index: {}]   ;;  %s3020_s5 = inlined_call_operand.vmem [shape: bf16[192,160], index: 5, kind: input, shape index: {}]   ;;  %s3021_s6 = inlined_call_operand.vmem [shape: f32[192,1], index: 6, kind: input, shape index: {}]   ;;  %s3022_s7 = inlined_call_operand.vmem [shape: bf16[128,192], index: 7, kind: input, shape index: {}]   ;;  %s3023_s8 = inlined_call_operand.vmem [shape: f32[128,1], index: 8, kind: input, shape index: {}]   ;;  %s3024_s9 = inlined_call_operand.vmem [shape: f32[128,1], index: 9, kind: input, shape index: {}]   ;;  %s3025_s10 = inlined_call_operand.<no memory space> [shape: f32[1,1], index: 10, kind: input, shape index: {}]   ;;  %s3026_s11 = inlined_call_operand.hbm [shape: f32[1,128], index: 11, kind: output, shape index: {}]  }
   0x1   :  { %v16_v0 = vstv %s3025_s10 }
   0x2   :  { %17 = vst [vmem:[#allocation2] sm:$0x1] %v16_v0 }
   0x3   :  { %v74_v1 = vld [vmem:[%s3017_s2 + $0x10] sm:$0xff]  ;;  %v72_v2 = vld [vmem:[%s3017_s2] sm:$0xff]  ;;  %v2365_v4 = vmov 0   ;;  %v43_v5 = vld [vmem:[%s3015_s0 + $0x8] sm:$0xff]  ;;  %vm123_vm0 = vcmask 97280   ;;  %v2366_v8 = vmov 0.0  }
   0x4   :  { %v42_v3 = vld [vmem:[%s3015_s0] sm:$0xff]  ;;  %2003 = vset.pattern.permute.xlu1 %v2365_v4  ;;  %2002 = vset.pattern.permute.xlu0 %v2365_v4  ;;  %v75_v7 = vld [vmem:[%s3017_s2 + $0x18] sm:$0xff]  ;;  %v73_v9 = vld [vmem:[%s3017_s2 + $0x8] sm:$0xff]  ;;  %vm2367_vm1 = vmmov 0  }
   0x5   :  { %90 = vperm.xlu1 %2003, %v74_v1   ;;  %80 = vperm.xlu0 %2002, %v72_v2   ;;  %v58_v6 = vpack.c.bf16 %v43_v5, %v42_v3  ;;  %v44_v10 = vld [vmem:[%s3015_s0 + $0x10] sm:$0xff]  ;;  %v45_v11 = vld [vmem:[%s3015_s0 + $0x18] sm:$0xff]  ;;  %v77_v14 = vld [vmem:[%s3017_s2 + $0x28] sm:$0xff] }
   0x6   :  { %1920 = vmatprep.subr.bf16.mxu0 %v2366_v8  ;;  %1936 = vmatprep.mubr.msk.bf16.mxu0 %vm2367_vm1, %v2366_v8  ;;  %v59_v13 = vpack.c.bf16 %v45_v11, %v44_v10  ;;  %v76_v15 = vld [vmem:[%s3017_s2 + $0x20] sm:$0xff]  ;;  %v268_v17 = vld [vmem:[%s3019_s4 + $0x8] sm:$0xff]  ;;  %v270_v22 = vld [vmem:[%s3019_s4 + $0x18] sm:$0xff] }
   0x7   :  { %v134_v12 = vsel %vm123_vm0, %v58_v6, 0  ;;  %v267_v18 = vld [vmem:[%s3019_s4] sm:$0xff]  ;;  %v47_v20 = vld [vmem:[%s3015_s0 + $0x28] sm:$0xff]  ;;  %v269_v23 = vld [vmem:[%s3019_s4 + $0x10] sm:$0xff] }
   0x8   :  { %1921 = vmatpush3.bf16.xpose.msra.mxu0 %v134_v12  ;;  %v137_v16 = vsel %vm123_vm0, %v59_v13, 0  ;;  %v46_v19 = vld [vmem:[%s3015_s0 + $0x20] sm:$0xff]  ;;  %v272_v25 = vld [vmem:[%s3019_s4 + $0x28] sm:$0xff]  ;;  %v48_v27 = vld [vmem:[%s3015_s0 + $0x30] sm:$0xff] }
   0x9   :  { %95 = vperm.xlu1 %2003, %v75_v7   ;;  %85 = vperm.xlu0 %2002, %v73_v9   ;;  %v60_v21 = vpack.c.bf16 %v47_v20, %v46_v19  ;;  %v271_v26 = vld [vmem:[%s3019_s4 + $0x20] sm:$0xff]  ;;  %v49_v28 = vld [vmem:[%s3015_s0 + $0x38] sm:$0xff]  ;;  %v273_v31 = vld [vmem:[%s3019_s4 + $0x30] sm:$0xff] }
   0xa   :  { %1922 = vmatprep.subr.bf16.mxu0 %v2366_v8  ;;  %v61_v29 = vpack.c.bf16 %v49_v28, %v48_v27  ;;  %v274_v30 = vld [vmem:[%s3019_s4 + $0x38] sm:$0xff]  ;;  %v276_v33 = vld [vmem:[%s3019_s4 + $0x48] sm:$0xff]  ;;  %v275_v34 = vld [vmem:[%s3019_s4 + $0x40] sm:$0xff] }
   0xb   :  { %v140_v24 = vsel %vm123_vm0, %v60_v21, 0  ;;  %v50_v35 = vld [vmem:[%s3015_s0 + $0x40] sm:$0xff]  ;;  %v51_v36 = vld [vmem:[%s3015_s0 + $0x48] sm:$0xff]  ;;  %v278_v38 = vld [vmem:[%s3019_s4 + $0x58] sm:$0xff] }
   0xc   :  { %v143_v32 = vsel %vm123_vm0, %v61_v29, 0  ;;  %v62_v37 = vpack.c.bf16 %v51_v36, %v50_v35  ;;  %v277_v39 = vld [vmem:[%s3019_s4 + $0x50] sm:$0xff]  ;;  %v280_v41 = vld [vmem:[%s3019_s4 + $0x68] sm:$0xff]  ;;  %v279_v42 = vld [vmem:[%s3019_s4 + $0x60] sm:$0xff] }
   0xd   :  { %105 = vperm.xlu1 %2003, %v77_v14   ;;  %100 = vperm.xlu0 %2002, %v76_v15   ;;  %v52_v43 = vld [vmem:[%s3015_s0 + $0x50] sm:$0xff]  ;;  %v53_v44 = vld [vmem:[%s3015_s0 + $0x58] sm:$0xff]  ;;  %v284_v48 = vld [vmem:[%s3019_s4 + $0x88] sm:$0xff] }
   0xe   :  { %v146_v40 = vsel %vm123_vm0, %v62_v37, 0  ;;  %v282_v45 = vld [vmem:[%s3019_s4 + $0x78] sm:$0xff]  ;;  %v281_v46 = vld [vmem:[%s3019_s4 + $0x70] sm:$0xff]  ;;  %v63_v47 = vpack.c.bf16 %v53_v44, %v52_v43  ;;  %v283_v49 = vld [vmem:[%s3019_s4 + $0x80] sm:$0xff] }
   0xf   :  { %v54_v50 = vld [vmem:[%s3015_s0 + $0x60] sm:$0xff]  ;;  %v55_v51 = vld [vmem:[%s3015_s0 + $0x68] sm:$0xff]  ;;  %v286_v53 = vld [vmem:[%s3019_s4 + $0x98] sm:$0xff] }
  0x10   :  { %1923 = vmatpush3.bf16.xpose.msra.mxu0 %v137_v16  ;;  %v149_v52 = vsel %vm123_vm0, %v63_v47, 0  ;;  %v285_v54 = vld [vmem:[%s3019_s4 + $0x90] sm:$0xff]  ;;  %v64_v55 = vpack.c.bf16 %v55_v51, %v54_v50  ;;  %v716_v56 = vld [vmem:[%s3021_s6 + $0x8] sm:$0xff]  ;;  %v715_v57 = vld [vmem:[%s3021_s6] sm:$0xff] }
  0x11   :  { %294 = vperm.xlu1 %2003, %v268_v17   ;;  %289 = vperm.xlu0 %2002, %v267_v18   ;;  %v56_v58 = vld [vmem:[%s3015_s0 + $0x70] sm:$0xff]  ;;  %v57_v59 = vld [vmem:[%s3015_s0 + $0x78] sm:$0xff] }
  0x12   :  { %1924 = vmatprep.subr.bf16.mxu0 %v2366_v8  ;;  %v152_v60 = vsel %vm123_vm0, %v64_v55, 0  ;;  %v718_v61 = vld [vmem:[%s3021_s6 + $0x18] sm:$0xff]  ;;  %v717_v62 = vld [vmem:[%s3021_s6 + $0x10] sm:$0xff]  ;;  %v65_v63 = vpack.c.bf16 %v57_v59, %v56_v58 }
  0x15   :  { %304 = vperm.xlu1 %2003, %v270_v22   ;;  %299 = vperm.xlu0 %2002, %v269_v23  }
  0x18   :  { %1925 = vmatpush3.bf16.xpose.msra.mxu0 %v140_v24 }
  0x19   :  { %314 = vperm.xlu1 %2003, %v272_v25   ;;  %309 = vperm.xlu0 %2002, %v271_v26  }
  0x1a   :  { %1926 = vmatprep.subr.bf16.mxu0 %v2366_v8 }
  0x1d   :  { %324 = vperm.xlu1 %2003, %v274_v30   ;;  %319 = vperm.xlu0 %2002, %v273_v31  }
  0x20   :  { %1927 = vmatpush3.bf16.xpose.msra.mxu0 %v143_v32 }
  0x21   :  { %334 = vperm.xlu1 %2003, %v276_v33   ;;  %329 = vperm.xlu0 %2002, %v275_v34  }
  0x22   :  { %1928 = vmatprep.subr.bf16.mxu0 %v2366_v8 }
  0x25   :  { %344 = vperm.xlu1 %2003, %v278_v38   ;;  %339 = vperm.xlu0 %2002, %v277_v39  }
  0x28   :  { %1929 = vmatpush3.bf16.xpose.msra.mxu0 %v146_v40 }
  0x29   :  { %354 = vperm.xlu1 %2003, %v280_v41   ;;  %349 = vperm.xlu0 %2002, %v279_v42  }
  0x2a   :  { %1930 = vmatprep.subr.bf16.mxu0 %v2366_v8 }
  0x2d   :  { %364 = vperm.xlu1 %2003, %v282_v45   ;;  %359 = vperm.xlu0 %2002, %v281_v46  }
  0x30   :  { %1931 = vmatpush3.bf16.xpose.msra.mxu0 %v149_v52 }
  0x31   :  { %374 = vperm.xlu1 %2003, %v284_v48   ;;  %369 = vperm.xlu0 %2002, %v283_v49  }
  0x32   :  { %1932 = vmatprep.subr.bf16.mxu0 %v2366_v8 }
  0x35   :  { %384 = vperm.xlu1 %2003, %v286_v53   ;;  %379 = vperm.xlu0 %2002, %v285_v54  }
  0x38   :  { %1933 = vmatpush3.bf16.xpose.msra.mxu0 %v152_v60 }
  0x39   :  { %746 = vperm.xlu1 %2003, %v716_v56   ;;  %741 = vperm.xlu0 %2002, %v715_v57  }
  0x3a   :  { %1934 = vmatprep.subr.bf16.mxu0 %v2366_v8 }
  0x3b   :  { %18 = vsyncpa [#allocation4], 0  ;;  %v155_v0 = vsel %vm123_vm0, %v65_v63, 0  ;;  %v720_v1 = vld [vmem:[%s3021_s6 + $0x28] sm:$0xff]  ;;  %v719_v2 = vld [vmem:[%s3021_s6 + $0x20] sm:$0xff]  ;;  %vm437_vm2 = vcmask 392192  }
  0x3c   :  { %v722_v3 = vld [vmem:[%s3021_s6 + $0x38] sm:$0xff]  ;;  %v721_v5 = vld [vmem:[%s3021_s6 + $0x30] sm:$0xff]  ;;  %v2004_v6 = vld [vmem:[%s3016_s1] sm:$0xff]   ;;  %vm967_vm3 = vcmask 261120   ;;  %vm1449_vm4 = vcmask 523264  }
  0x3d   :  { %756 = vperm.xlu1 %2003, %v718_v61   ;;  %751 = vperm.xlu0 %2002, %v717_v62   ;;  %v724_v7 = vld [vmem:[%s3021_s6 + $0x48] sm:$0xff]  ;;  %v723_v9 = vld [vmem:[%s3021_s6 + $0x40] sm:$0xff]  ;;  %v726_v10 = vld [vmem:[%s3021_s6 + $0x58] sm:$0xff] }
  0x3e   :  { %v725_v11 = vld [vmem:[%s3021_s6 + $0x50] sm:$0xff]  ;;  %v2005_v12 = vld [vmem:[%s3016_s1 + $0x8] sm:$0xff]   ;;  %v727_v14 = vld [vmem:[%s3021_s6 + $0x60] sm:$0xff] }
  0x3f   :  { %v728_v13 = vld [vmem:[%s3021_s6 + $0x68] sm:$0xff]  ;;  %v730_v15 = vld [vmem:[%s3021_s6 + $0x78] sm:$0xff]  ;;  %v729_v16 = vld [vmem:[%s3021_s6 + $0x70] sm:$0xff] }
  0x40   :  { %1935 = vmatpush3.bf16.xpose.msra.mxu0 %v155_v0  ;;  %v2006_v17 = vld [vmem:[%s3016_s1 + $0x10] sm:$0xff]   ;;  %v731_v18 = vld [vmem:[%s3021_s6 + $0x80] sm:$0xff]  ;;  %v734_v19 = vld [vmem:[%s3021_s6 + $0x98] sm:$0xff] }
  0x41   :  { %766 = vperm.xlu1 %2003, %v720_v1   ;;  %761 = vperm.xlu0 %2002, %v719_v2   ;;  %v733_v20 = vld [vmem:[%s3021_s6 + $0x90] sm:$0xff]  ;;  %v736_v21 = vld [vmem:[%s3021_s6 + $0xa8] sm:$0xff]  ;;  %v735_v22 = vld [vmem:[%s3021_s6 + $0xa0] sm:$0xff] }
  0x42   :  { %1474 = vmatprep.subr.bf16.mxu0 %v2365_v4  ;;  %v738_v23 = vld [vmem:[%s3021_s6 + $0xb8] sm:$0xff]  ;;  %v737_v24 = vld [vmem:[%s3021_s6 + $0xb0] sm:$0xff]  ;;  %v1282_v25 = vld [vmem:[%s3023_s8 + $0x8] sm:$0xff] }
  0x43   :  { %v1281_v26 = vld [vmem:[%s3023_s8] sm:$0xff]  ;;  %v1284_v27 = vld [vmem:[%s3023_s8 + $0x18] sm:$0xff]  ;;  %v1283_v28 = vld [vmem:[%s3023_s8 + $0x10] sm:$0xff] }
  0x44   :  { %v1286_v29 = vld [vmem:[%s3023_s8 + $0x28] sm:$0xff]  ;;  %v1285_v30 = vld [vmem:[%s3023_s8 + $0x20] sm:$0xff]  ;;  %v1288_v31 = vld [vmem:[%s3023_s8 + $0x38] sm:$0xff] }
  0x45   :  { %776 = vperm.xlu1 %2003, %v722_v3   ;;  %771 = vperm.xlu0 %2002, %v721_v5   ;;  %v1287_v32 = vld [vmem:[%s3023_s8 + $0x30] sm:$0xff]  ;;  %v1290_v33 = vld [vmem:[%s3023_s8 + $0x48] sm:$0xff]  ;;  %v1289_v34 = vld [vmem:[%s3023_s8 + $0x40] sm:$0xff] }
  0x46   :  { %v1292_v35 = vld [vmem:[%s3023_s8 + $0x58] sm:$0xff]  ;;  %v1291_v36 = vld [vmem:[%s3023_s8 + $0x50] sm:$0xff]  ;;  %v1294_v37 = vld [vmem:[%s3023_s8 + $0x68] sm:$0xff] }
  0x47   :  { %1937 = vmatmul.mubr.msk.bf16.vlgmr.msra.gmra.mrb[0].mxu0 %vm123_vm0, %v2004_v6  ;;  %v1293_v38 = vld [vmem:[%s3023_s8 + $0x60] sm:$0xff]  ;;  %v1296_v39 = vld [vmem:[%s3023_s8 + $0x78] sm:$0xff]  ;;  %v1295_v40 = vld [vmem:[%s3023_s8 + $0x70] sm:$0xff] }
  0x48   :  { %1940 = vmatprep.mubr.msk.bf16.mxu0 %vm2367_vm1, %v2366_v8  ;;  %v1652_v41 = vld [vmem:[%s3024_s9 + $0x8] sm:$0xff]  ;;  %v1651_v42 = vld [vmem:[%s3024_s9] sm:$0xff]  ;;  %v1654_v43 = vld [vmem:[%s3024_s9 + $0x18] sm:$0xff] }
  0x49   :  { %786 = vperm.xlu1 %2003, %v724_v7   ;;  %781 = vperm.xlu0 %2002, %v723_v9   ;;  %v1653_v44 = vld [vmem:[%s3024_s9 + $0x10] sm:$0xff]  ;;  %v1656_v45 = vld [vmem:[%s3024_s9 + $0x28] sm:$0xff]  ;;  %v1655_v46 = vld [vmem:[%s3024_s9 + $0x20] sm:$0xff] }
  0x4a   :  { %v1658_v47 = vld [vmem:[%s3024_s9 + $0x38] sm:$0xff]  ;;  %v1657_v48 = vld [vmem:[%s3024_s9 + $0x30] sm:$0xff]  ;;  %v1660_v49 = vld [vmem:[%s3024_s9 + $0x48] sm:$0xff] }
  0x4b   :  { %v1659_v50 = vld [vmem:[%s3024_s9 + $0x40] sm:$0xff]  ;;  %v1662_v51 = vld [vmem:[%s3024_s9 + $0x58] sm:$0xff]  ;;  %v1661_v52 = vld [vmem:[%s3024_s9 + $0x50] sm:$0xff] }
  0x4c   :  { %v1664_v53 = vld [vmem:[%s3024_s9 + $0x68] sm:$0xff]  ;;  %v1663_v54 = vld [vmem:[%s3024_s9 + $0x60] sm:$0xff]  ;;  %v1666_v55 = vld [vmem:[%s3024_s9 + $0x78] sm:$0xff] }
  0x4d   :  { %796 = vperm.xlu1 %2003, %v726_v10   ;;  %791 = vperm.xlu0 %2002, %v725_v11   ;;  %v1665_v56 = vld [vmem:[%s3024_s9 + $0x70] sm:$0xff]  ;;  %v1784_v57 = vld [vmem:[#allocation2] sm:$0x1] }
  0x4e   :  { %v2007_v58 = vld [vmem:[%s3018_s3] sm:$0xff]  }
  0x4f   :  { %1941 = vmatmul.mubr.msk.bf16.gmra.mrb[4].mxu0 %vm123_vm0, %v2005_v12  ;;  %1954 = vmatprep.mubr.msk.bf16.mxu1 %vm437_vm2, %v2007_v58  ;;  %v2013_v58 = vld [vmem:[%s3018_s3 + $0x30] sm:$0xff]  }
  0x50   :  { %1944 = vmatprep.mubr.msk.bf16.mxu0 %vm2367_vm1, %v2366_v8  ;;  %v732_v8 = vld [vmem:[%s3021_s6 + $0x88] sm:$0xff] }
  0x51   :  { %806 = vperm.xlu1 %2003, %v728_v13   ;;  %801 = vperm.xlu0 %2002, %v727_v14  }
  0x55   :  { %816 = vperm.xlu1 %2003, %v730_v15   ;;  %811 = vperm.xlu0 %2002, %v729_v16  }
  0x57   :  { %1945 = vmatmul.mubr.msk.bf16.gmra.mrb[8].mxu0 %vm123_vm0, %v2006_v17 }
  0x59   :  { %826 = vperm.xlu1 %2003, %v732_v8   ;;  %821 = vperm.xlu0 %2002, %v731_v18  }
  0x5d   :  { %836 = vperm.xlu1 %2003, %v734_v19   ;;  %831 = vperm.xlu0 %2002, %v733_v20  }
  0x61   :  { %846 = vperm.xlu1 %2003, %v736_v21   ;;  %841 = vperm.xlu0 %2002, %v735_v22  }
  0x65   :  { %856 = vperm.xlu1 %2003, %v738_v23   ;;  %851 = vperm.xlu0 %2002, %v737_v24  }
  0x69   :  { %1304 = vperm.xlu1 %2003, %v1282_v25   ;;  %1299 = vperm.xlu0 %2002, %v1281_v26  }
  0x6d   :  { %1314 = vperm.xlu1 %2003, %v1284_v27   ;;  %1309 = vperm.xlu0 %2002, %v1283_v28  }
  0x71   :  { %1324 = vperm.xlu1 %2003, %v1286_v29   ;;  %1319 = vperm.xlu0 %2002, %v1285_v30  }
  0x75   :  { %1334 = vperm.xlu1 %2003, %v1288_v31   ;;  %1329 = vperm.xlu0 %2002, %v1287_v32  }
  0x79   :  { %1344 = vperm.xlu1 %2003, %v1290_v33   ;;  %1339 = vperm.xlu0 %2002, %v1289_v34  }
  0x7d   :  { %1354 = vperm.xlu1 %2003, %v1292_v35   ;;  %1349 = vperm.xlu0 %2002, %v1291_v36  }
  0x81   :  { %1364 = vperm.xlu1 %2003, %v1294_v37   ;;  %1359 = vperm.xlu0 %2002, %v1293_v38  }
  0x84   :  { %v81_v59 = vpop.permute.xlu0 %80  ;;  %v91_v5 = vpop.permute.xlu1 %90 }
  0x85   :  { %1374 = vperm.xlu1 %2003, %v1296_v39   ;;  %1369 = vperm.xlu0 %2002, %v1295_v40  }
  0x88   :  { %v86_v63 = vpop.permute.xlu0 %85  ;;  %v96_v13 = vpop.permute.xlu1 %95 }
  0x89   :  { %1674 = vperm.xlu1 %2003, %v1652_v41   ;;  %1669 = vperm.xlu0 %2002, %v1651_v42  }
  0x8c   :  { %v101_v20 = vpop.permute.xlu0 %100  ;;  %v106_v25 = vpop.permute.xlu1 %105 }
  0x8d   :  { %1684 = vperm.xlu1 %2003, %v1654_v43   ;;  %1679 = vperm.xlu0 %2002, %v1653_v44  }
  0x91   :  { %1694 = vperm.xlu1 %2003, %v1656_v45   ;;  %1689 = vperm.xlu0 %2002, %v1655_v46  }
  0x95   :  { %1704 = vperm.xlu1 %2003, %v1658_v47   ;;  %1699 = vperm.xlu0 %2002, %v1657_v48  }
  0x99   :  { %1714 = vperm.xlu1 %2003, %v1660_v49   ;;  %1709 = vperm.xlu0 %2002, %v1659_v50  }
  0x9d   :  { %1724 = vperm.xlu1 %2003, %v1662_v51   ;;  %1719 = vperm.xlu0 %2002, %v1661_v52  }
  0xa1   :  { %1734 = vperm.xlu1 %2003, %v1664_v53   ;;  %1729 = vperm.xlu0 %2002, %v1663_v54   ;;  %v2008_v53 = vld [vmem:[%s3018_s3 + $0x8] sm:$0xff]   ;;  %v2009_v54 = vld [vmem:[%s3018_s3 + $0x10] sm:$0xff]  }
  0xa5   :  { %1744 = vperm.xlu1 %2003, %v1666_v55   ;;  %1739 = vperm.xlu0 %2002, %v1665_v56   ;;  %v2010_v55 = vld [vmem:[%s3018_s3 + $0x18] sm:$0xff]   ;;  %v2011_v56 = vld [vmem:[%s3018_s3 + $0x20] sm:$0xff]  }
  0xa9   :  { %1787 = vperm.xlu0 %2002, %v1784_v57   ;;  %v2012_v57 = vld [vmem:[%s3018_s3 + $0x28] sm:$0xff]  }
 0x11a   :  { %v191_v60 = vpop.f32.mrb[0].mxu0 }
 0x11b   :  { %v192_v61 = vadd.f32 %v191_v60, %v81_v59  ;;  %v1938_v62 = vpop.f32.mrb[1].mxu0  ;;  %v2014_v59 = vld [vmem:[%s3018_s3 + $0x38] sm:$0xff]   ;;  %v2015_v60 = vld [vmem:[%s3018_s3 + $0x40] sm:$0xff]  }
 0x11c   :  { %v194_v0 = vpop.f32.mrb[2].mxu0  ;;  %v2019_v62 = vld [vmem:[%s3020_s5 + $0x4] ss:$8 sps:$4 sm:$0xff]  }
 0x11d   :  { %v214_v1 = vsub.f32 0.0, %v192_v61  ;;  %v195_v2 = vadd.f32 %v194_v0, %v86_v63  ;;  %v1939_v3 = vpop.f32.mrb[3].mxu0  ;;  %v2016_v61 = vld [vmem:[%s3018_s3 + $0x48] sm:$0xff]   ;;  %v290_v63 = vpop.permute.xlu0 %289 }
 0x11e   :  { %v295_v0 = vpop.permute.xlu1 %294 }
 0x11f   :  { %v220_v6 = vmul.f32 1.442695, %v214_v1  ;;  %v215_v7 = vsub.f32 0.0, %v195_v2 }
 0x121   :  { %2077 = vpow2.f32 %v220_v6  ;;  %v222_v9 = vmul.f32 1.442695, %v215_v7  ;;  %v300_v1 = vpop.permute.xlu0 %299 }
 0x122   :  { %v199_v10 = vpop.f32.mrb[4].mxu0  ;;  %v305_v2 = vpop.permute.xlu1 %304 }
 0x123   :  { %2079 = vpow2.f32 %v222_v9  ;;  %v200_v11 = vadd.f32 %v199_v10, %v91_v5  ;;  %v1942_v12 = vpop.f32.mrb[5].mxu0 }
 0x124   :  { %v202_v14 = vpop.f32.mrb[6].mxu0 }
 0x125   :  { %v216_v15 = vsub.f32 0.0, %v200_v11  ;;  %v203_v16 = vadd.f32 %v202_v14, %v96_v13  ;;  %v1943_v17 = vpop.f32.mrb[7].mxu0  ;;  %v310_v3 = vpop.permute.xlu0 %309 }
 0x126   :  { %v315_v5 = vpop.permute.xlu1 %314 }
 0x127   :  { %v224_v8 = vmul.f32 1.442695, %v216_v15  ;;  %v217_v18 = vsub.f32 0.0, %v203_v16 }
 0x129   :  { %2081 = vpow2.f32 %v224_v8  ;;  %v226_v19 = vmul.f32 1.442695, %v217_v18  ;;  %v320_v6 = vpop.permute.xlu0 %319 }
 0x12a   :  { %v207_v21 = vpop.f32.mrb[8].mxu0  ;;  %v325_v7 = vpop.permute.xlu1 %324 }
 0x12b   :  { %v2078_v22 = vpop.eup %2077  ;;  %2083 = vpow2.f32 %v226_v19  ;;  %v208_v23 = vadd.f32 %v207_v21, %v101_v20  ;;  %v1946_v24 = vpop.f32.mrb[9].mxu0 }
 0x12c   :  { %v232_v26 = vadd.f32 1.0, %v2078_v22  ;;  %v210_v27 = vpop.f32.mrb[10].mxu0 }
 0x12d   :  { %v2080_v28 = vpop.eup %2079  ;;  %v218_v29 = vsub.f32 0.0, %v208_v23  ;;  %v211_v30 = vadd.f32 %v210_v27, %v106_v25  ;;  %v1947_v31 = vpop.f32.mrb[11].mxu0 }
 0x12e   :  { %v233_v32 = vadd.f32 1.0, %v2080_v28  ;;  %2085 = vrcp.f32 %v232_v26  ;;  %v330_v12 = vpop.permute.xlu0 %329  ;;  %v335_v8 = vpop.permute.xlu1 %334 }
 0x12f   :  { %v228_v33 = vmul.f32 1.442695, %v218_v29  ;;  %v219_v34 = vsub.f32 0.0, %v211_v30 }
 0x130   :  { %2087 = vrcp.f32 %v233_v32 }
 0x131   :  { %2089 = vpow2.f32 %v228_v33  ;;  %v230_v35 = vmul.f32 1.442695, %v219_v34 }
 0x132   :  { %v340_v25 = vpop.permute.xlu0 %339  ;;  %v345_v30 = vpop.permute.xlu1 %344 }
 0x133   :  { %v2082_v36 = vpop.eup %2081  ;;  %2091 = vpow2.f32 %v230_v35 }
 0x134   :  { %v234_v37 = vadd.f32 1.0, %v2082_v36 }
 0x135   :  { %v2084_v38 = vpop.eup %2083 }
 0x136   :  { %v235_v39 = vadd.f32 1.0, %v2084_v38  ;;  %2093 = vrcp.f32 %v234_v37 }
 0x138   :  { %2095 = vrcp.f32 %v235_v39  ;;  %v2086_v40 = vpop.eup %2085 }
 0x13a   :  { %v2088_v41 = vpop.eup %2087 }
 0x13b   :  { %v2090_v42 = vpop.eup %2089  ;;  %v264_v43 = vpack.c.bf16 %v2088_v41, %v2086_v40  ;;  %v350_v40 = vpop.permute.xlu0 %349 }
 0x13c   :  { %v236_v44 = vadd.f32 1.0, %v2090_v42 }
 0x13d   :  { %v2092_v45 = vpop.eup %2091  ;;  %1948 = vmatprep.subr.bf16.mxu1 %v264_v43 }
 0x13e   :  { %v237_v46 = vadd.f32 1.0, %v2092_v45  ;;  %1949 = vmatpush3.bf16.msra.mxu1 %v264_v43  ;;  %2097 = vrcp.f32 %v236_v44  ;;  %v355_v44 = vpop.permute.xlu1 %354 }
 0x140   :  { %2099 = vrcp.f32 %v237_v46  ;;  %v2094_v47 = vpop.eup %2093 }
 0x142   :  { %v2096_v48 = vpop.eup %2095 }
 0x143   :  { %v265_v49 = vpack.c.bf16 %v2096_v48, %v2094_v47 }
 0x145   :  { %1950 = vmatprep.subr.bf16.mxu1 %v265_v49 }
 0x146   :  { %1951 = vmatpush3.bf16.msra.mxu1 %v265_v49 }
 0x148   :  { %v2098_v50 = vpop.eup %2097 }
 0x14a   :  { %v2100_v51 = vpop.eup %2099 }
 0x14b   :  { %v266_v52 = vpack.c.bf16 %v2100_v51, %v2098_v50 }
 0x14d   :  { %1952 = vmatprep.subr.bf16.mxu1 %v266_v52 }
 0x14e   :  { %1953 = vmatpush3.bf16.msra.mxu1 %v266_v52 }
 0x14f   :  { %1004 = vmatprep.subr.bf16.mxu1 %v2365_v4 }
 0x151   :  { %1955 = vmatmul.mubr.msk.bf16.vlgmr.msra.gmra.mrb[0].mxu1 %vm437_vm2, %v2008_v53 }
 0x152   :  { %1958 = vmatprep.mubr.msk.bf16.mxu1 %vm437_vm2, %v2009_v54 }
 0x159   :  { %1959 = vmatmul.mubr.msk.bf16.gmra.mrb[4].mxu1 %vm437_vm2, %v2010_v55 }
 0x15a   :  { %1962 = vmatprep.mubr.msk.bf16.mxu1 %vm437_vm2, %v2011_v56 }
 0x161   :  { %1963 = vmatmul.mubr.msk.bf16.gmra.mrb[8].mxu1 %vm437_vm2, %v2012_v57 }
 0x162   :  { %1966 = vmatprep.mubr.msk.bf16.mxu1 %vm437_vm2, %v2013_v58 }
 0x169   :  { %1967 = vmatmul.mubr.msk.bf16.gmra.mrb[12].mxu1 %vm437_vm2, %v2014_v59 }
 0x16a   :  { %1970 = vmatprep.mubr.msk.bf16.mxu1 %vm437_vm2, %v2015_v60  ;;  %v360_v60 = vpop.permute.xlu0 %359 }
 0x171   :  { %1971 = vmatmul.mubr.msk.bf16.gmra.mrb[16].mxu1 %vm437_vm2, %v2016_v61 }
 0x172   :  { %1860 = vmatprep.mubr.msk.bf16.mxu1 %vm967_vm3, %v2019_v62 }
 0x224   :  { %v1956_v9 = vpop.f32.mrb[0].mxu1 }
 0x225   :  { %v511_v10 = vadd.f32 %v1956_v9, %v300_v1  ;;  %v502_v11 = vpop.f32.mrb[1].mxu1 }
 0x226   :  { %v503_v13 = vadd.f32 %v502_v11, %v290_v63  ;;  %v1957_v14 = vpop.f32.mrb[2].mxu1 }
 0x227   :  { %v583_v15 = vsub.f32 0.0, %v511_v10  ;;  %v514_v16 = vadd.f32 %v1957_v14, %v305_v2  ;;  %v505_v17 = vpop.f32.mrb[3].mxu1 }
 0x228   :  { %v581_v18 = vsub.f32 0.0, %v503_v13  ;;  %v506_v19 = vadd.f32 %v505_v17, %v295_v0 }
 0x229   :  { %v605_v20 = vmul.f32 1.442695, %v583_v15  ;;  %v584_v21 = vsub.f32 0.0, %v514_v16  ;;  %v370_v15 = vpop.permute.xlu0 %369 }
 0x22a   :  { %v601_v22 = vmul.f32 1.442695, %v581_v18  ;;  %v582_v23 = vsub.f32 0.0, %v506_v19 }
 0x22b   :  { %2101 = vpow2.f32 %v605_v20  ;;  %v607_v24 = vmul.f32 1.442695, %v584_v21 }
 0x22c   :  { %2103 = vpow2.f32 %v601_v22  ;;  %v603_v26 = vmul.f32 1.442695, %v582_v23  ;;  %v1960_v27 = vpop.f32.mrb[4].mxu1 }
 0x22d   :  { %2105 = vpow2.f32 %v607_v24  ;;  %v527_v28 = vadd.f32 %v1960_v27, %v320_v6  ;;  %v518_v29 = vpop.f32.mrb[5].mxu1 }
 0x22e   :  { %2107 = vpow2.f32 %v603_v26  ;;  %v519_v31 = vadd.f32 %v518_v29, %v310_v3  ;;  %v1961_v32 = vpop.f32.mrb[6].mxu1  ;;  %v365_v3 = vpop.permute.xlu1 %364 }
 0x22f   :  { %v587_v33 = vsub.f32 0.0, %v527_v28  ;;  %v530_v34 = vadd.f32 %v1961_v32, %v325_v7  ;;  %v521_v35 = vpop.f32.mrb[7].mxu1 }
 0x230   :  { %v585_v36 = vsub.f32 0.0, %v519_v31  ;;  %v522_v37 = vadd.f32 %v521_v35, %v315_v5 }
 0x231   :  { %v613_v38 = vmul.f32 1.442695, %v587_v33  ;;  %v588_v39 = vsub.f32 0.0, %v530_v34 }
 0x232   :  { %v609_v41 = vmul.f32 1.442695, %v585_v36  ;;  %v586_v42 = vsub.f32 0.0, %v522_v37  ;;  %v375_v24 = vpop.permute.xlu1 %374  ;;  %v380_v37 = vpop.permute.xlu0 %379 }
 0x233   :  { %2109 = vpow2.f32 %v613_v38  ;;  %v615_v43 = vmul.f32 1.442695, %v588_v39 }
 0x234   :  { %2111 = vpow2.f32 %v609_v41  ;;  %v611_v45 = vmul.f32 1.442695, %v586_v42  ;;  %v1964_v46 = vpop.f32.mrb[8].mxu1 }
 0x235   :  { %v2102_v47 = vpop.eup %2101  ;;  %2113 = vpow2.f32 %v615_v43  ;;  %v543_v48 = vadd.f32 %v1964_v46, %v340_v25  ;;  %v534_v49 = vpop.f32.mrb[9].mxu1 }
 0x236   :  { %v2104_v50 = vpop.eup %2103  ;;  %v643_v51 = vadd.f32 1.0, %v2102_v47  ;;  %2115 = vpow2.f32 %v611_v45  ;;  %v535_v52 = vadd.f32 %v534_v49, %v330_v12  ;;  %v1965_v53 = vpop.f32.mrb[10].mxu1 }
 0x237   :  { %v2106_v54 = vpop.eup %2105  ;;  %v641_v55 = vadd.f32 1.0, %v2104_v50  ;;  %v591_v56 = vsub.f32 0.0, %v543_v48  ;;  %v546_v57 = vadd.f32 %v1965_v53, %v345_v30  ;;  %v537_v58 = vpop.f32.mrb[11].mxu1 }
 0x238   :  { %v2108_v59 = vpop.eup %2107  ;;  %2117 = vrcp.f32 %v643_v51  ;;  %v644_v61 = vadd.f32 1.0, %v2106_v54  ;;  %v589_v62 = vsub.f32 0.0, %v535_v52  ;;  %v538_v63 = vadd.f32 %v537_v58, %v335_v8  ;;  %v385_v45 = vpop.permute.xlu1 %384 }
 0x239   :  { %2119 = vrcp.f32 %v641_v55  ;;  %v642_v0 = vadd.f32 1.0, %v2108_v59  ;;  %v621_v1 = vmul.f32 1.442695, %v591_v56  ;;  %v592_v2 = vsub.f32 0.0, %v546_v57 }
 0x23a   :  { %2121 = vrcp.f32 %v644_v61  ;;  %v617_v5 = vmul.f32 1.442695, %v589_v62  ;;  %v590_v6 = vsub.f32 0.0, %v538_v63 }
 0x23b   :  { %2123 = vrcp.f32 %v642_v0  ;;  %v623_v7 = vmul.f32 1.442695, %v592_v2 }
 0x23c   :  { %2125 = vpow2.f32 %v621_v1  ;;  %v619_v9 = vmul.f32 1.442695, %v590_v6  ;;  %v1968_v10 = vpop.f32.mrb[12].mxu1 }
 0x23d   :  { %v2110_v11 = vpop.eup %2109  ;;  %2127 = vpow2.f32 %v617_v5  ;;  %v559_v12 = vadd.f32 %v1968_v10, %v360_v60  ;;  %v550_v13 = vpop.f32.mrb[13].mxu1 }
 0x23e   :  { %v2112_v14 = vpop.eup %2111  ;;  %v647_v16 = vadd.f32 1.0, %v2110_v11  ;;  %2129 = vpow2.f32 %v623_v7  ;;  %v551_v17 = vadd.f32 %v550_v13, %v350_v40  ;;  %v1969_v8 = vpop.f32.mrb[14].mxu1 }
 0x23f   :  { %v2114_v18 = vpop.eup %2113  ;;  %v645_v19 = vadd.f32 1.0, %v2112_v14  ;;  %2131 = vpow2.f32 %v619_v9  ;;  %v595_v20 = vsub.f32 0.0, %v559_v12  ;;  %v562_v21 = vadd.f32 %v1969_v8, %v365_v3  ;;  %v553_v22 = vpop.f32.mrb[15].mxu1 }
 0x240   :  { %v2116_v23 = vpop.eup %2115  ;;  %2133 = vrcp.f32 %v647_v16  ;;  %v648_v25 = vadd.f32 1.0, %v2114_v18  ;;  %v593_v26 = vsub.f32 0.0, %v551_v17  ;;  %v554_v27 = vadd.f32 %v553_v22, %v355_v44 }
 0x241   :  { %2135 = vrcp.f32 %v645_v19  ;;  %v646_v28 = vadd.f32 1.0, %v2116_v23  ;;  %v629_v29 = vmul.f32 1.442695, %v595_v20  ;;  %v596_v30 = vsub.f32 0.0, %v562_v21 }
 0x242   :  { %v2118_v31 = vpop.eup %2117  ;;  %2137 = vrcp.f32 %v648_v25  ;;  %v625_v32 = vmul.f32 1.442695, %v593_v26  ;;  %v594_v33 = vsub.f32 0.0, %v554_v27 }
 0x243   :  { %v2120_v34 = vpop.eup %2119  ;;  %2139 = vrcp.f32 %v646_v28  ;;  %v631_v35 = vmul.f32 1.442695, %v596_v30 }
 0x244   :  { %v2122_v36 = vpop.eup %2121  ;;  %2141 = vpow2.f32 %v629_v29  ;;  %v627_v38 = vmul.f32 1.442695, %v594_v33  ;;  %v1972_v39 = vpop.f32.mrb[16].mxu1 }
 0x245   :  { %v2124_v40 = vpop.eup %2123  ;;  %2143 = vpow2.f32 %v625_v32  ;;  %v575_v41 = vadd.f32 %v1972_v39, %v380_v37  ;;  %v566_v42 = vpop.f32.mrb[17].mxu1  ;;  %v706_v43 = vpack.c.bf16 %v2122_v36, %v2118_v31 }
 0x246   :  { %v2126_v44 = vpop.eup %2125  ;;  %2145 = vpow2.f32 %v631_v35  ;;  %v567_v46 = vadd.f32 %v566_v42, %v370_v15  ;;  %v1973_v47 = vpop.f32.mrb[18].mxu1  ;;  %v705_v48 = vpack.c.bf16 %v2124_v40, %v2120_v34 }
 0x247   :  { %v2128_v49 = vpop.eup %2127  ;;  %v651_v50 = vadd.f32 1.0, %v2126_v44  ;;  %2147 = vpow2.f32 %v627_v38  ;;  %v599_v51 = vsub.f32 0.0, %v575_v41  ;;  %v578_v52 = vadd.f32 %v1973_v47, %v385_v45  ;;  %v569_v53 = vpop.f32.mrb[19].mxu1  ;;  %v2017_v44 = vld [vmem:[%s3020_s5] ss:$8 sps:$4 sm:$0xff]  }
 0x248   :  { %v2130_v54 = vpop.eup %2129  ;;  %v649_v55 = vadd.f32 1.0, %v2128_v49  ;;  %v597_v56 = vsub.f32 0.0, %v567_v46  ;;  %v570_v57 = vadd.f32 %v569_v53, %v375_v24  ;;  %1005 = vmatpush1.bf16.msra.mxu1 %v705_v48  ;;  %v2020_v45 = vld [vmem:[%s3020_s5 + $0x14] ss:$8 sps:$4 sm:$0xff]   ;;  %v2022_v46 = vld [vmem:[%s3020_s5 + $0x10] ss:$8 sps:$4 sm:$0xff]  }
 0x249   :  { %v2132_v58 = vpop.eup %2131  ;;  %2149 = vrcp.f32 %v651_v50  ;;  %v652_v59 = vadd.f32 1.0, %v2130_v54  ;;  %v637_v60 = vmul.f32 1.442695, %v599_v51  ;;  %v600_v61 = vsub.f32 0.0, %v578_v52  ;;  %1006 = vmatprep.subr.bf16.mxu1 %v2365_v4  ;;  %v2023_v47 = vld [vmem:[%s3020_s5 + $0x24] ss:$8 sps:$4 sm:$0xff]  }
 0x24a   :  { %v2134_v62 = vpop.eup %2133  ;;  %2151 = vrcp.f32 %v649_v55  ;;  %v650_v63 = vadd.f32 1.0, %v2132_v58  ;;  %v633_v0 = vmul.f32 1.442695, %v597_v56  ;;  %v598_v1 = vsub.f32 0.0, %v570_v57  ;;  %v2025_v48 = vld [vmem:[%s3020_s5 + $0x20] ss:$8 sps:$4 sm:$0xff]  }
 0x24b   :  { %v2136_v2 = vpop.eup %2135  ;;  %2153 = vrcp.f32 %v652_v59  ;;  %v639_v3 = vmul.f32 1.442695, %v600_v61  ;;  %v2026_v49 = vld [vmem:[%s3020_s5 + $0x34] ss:$8 sps:$4 sm:$0xff]   ;;  %v2028_v50 = vld [vmem:[%s3020_s5 + $0x30] ss:$8 sps:$4 sm:$0xff]  }
 0x24c   :  { %v2138_v5 = vpop.eup %2137  ;;  %2155 = vrcp.f32 %v650_v63  ;;  %v635_v6 = vmul.f32 1.442695, %v598_v1  ;;  %1007 = vmatpush1.bf16.msra.mxu1 %v706_v43  ;;  %v2029_v51 = vld [vmem:[%s3020_s5 + $0x44] ss:$8 sps:$4 sm:$0xff]   ;;  %v2031_v52 = vld [vmem:[%s3020_s5 + $0x40] ss:$8 sps:$4 sm:$0xff]  }
 0x24d   :  { %v2140_v7 = vpop.eup %2139  ;;  %2157 = vpow2.f32 %v637_v60  ;;  %1008 = vmatprep.subr.bf16.mxu1 %v2365_v4  ;;  %v708_v9 = vpack.c.bf16 %v2138_v5, %v2134_v62  ;;  %v2032_v53 = vld [vmem:[%s3020_s5 + $0x54] ss:$8 sps:$4 sm:$0xff]   ;;  %v2034_v54 = vld [vmem:[%s3020_s5 + $0x50] ss:$8 sps:$4 sm:$0xff]   ;;  %v2035_v55 = vld [vmem:[%s3020_s5 + $0x64] ss:$8 sps:$4 sm:$0xff]  }
 0x24e   :  { %v2142_v10 = vpop.eup %2141  ;;  %2159 = vpow2.f32 %v633_v0  ;;  %v707_v11 = vpack.c.bf16 %v2140_v7, %v2136_v2  ;;  %v2037_v56 = vld [vmem:[%s3020_s5 + $0x60] ss:$8 sps:$4 sm:$0xff]   ;;  %v2038_v57 = vld [vmem:[%s3020_s5 + $0x74] ss:$8 sps:$4 sm:$0xff]   ;;  %v2040_v58 = vld [vmem:[%s3020_s5 + $0x70] ss:$8 sps:$4 sm:$0xff]  }
 0x24f   :  { %v2144_v12 = vpop.eup %2143  ;;  %v655_v13 = vadd.f32 1.0, %v2142_v10  ;;  %2161 = vpow2.f32 %v639_v3  ;;  %v2041_v59 = vld [vmem:[%s3020_s5 + $0x84] ss:$8 sps:$4 sm:$0xff]   ;;  %v2043_v60 = vld [vmem:[%s3020_s5 + $0x80] ss:$8 sps:$4 sm:$0xff]  }
 0x250   :  { %v2146_v14 = vpop.eup %2145  ;;  %v653_v15 = vadd.f32 1.0, %v2144_v12  ;;  %2163 = vpow2.f32 %v635_v6  ;;  %1009 = vmatpush1.bf16.msra.mxu1 %v707_v11  ;;  %v2044_v61 = vld [vmem:[%s3020_s5 + $0x94] ss:$8 sps:$4 sm:$0xff]   ;;  %v2046_v62 = vld [vmem:[%s3020_s5 + $0x90] ss:$8 sps:$4 sm:$0xff]   ;;  %v742_v6 = vpop.permute.xlu0 %741 }
 0x251   :  { %v2148_v16 = vpop.eup %2147  ;;  %2165 = vrcp.f32 %v655_v13  ;;  %v656_v17 = vadd.f32 1.0, %v2146_v14  ;;  %1010 = vmatprep.subr.bf16.mxu1 %v2365_v4  ;;  %v2047_v63 = vld [vmem:[%s3020_s5 + $0xa4] ss:$8 sps:$4 sm:$0xff]   ;;  %v2049_v0 = vld [vmem:[%s3020_s5 + $0xa0] ss:$8 sps:$4 sm:$0xff]   ;;  %v747_v11 = vpop.permute.xlu1 %746 }
 0x252   :  { %2167 = vrcp.f32 %v653_v15  ;;  %v654_v8 = vadd.f32 1.0, %v2148_v16  ;;  %v2050_v1 = vld [vmem:[%s3020_s5 + $0xb4] ss:$8 sps:$4 sm:$0xff]   ;;  %v2052_v2 = vld [vmem:[%s3020_s5 + $0xb0] ss:$8 sps:$4 sm:$0xff]  }
 0x253   :  { %v2150_v18 = vpop.eup %2149  ;;  %2169 = vrcp.f32 %v656_v17  ;;  %v2055_v3 = vld [vmem:[%s3022_s7 + $0x4] ss:$8 sps:$4 sm:$0xff]   ;;  %v2058_v5 = vld [vmem:[%s3022_s7 + $0x74] ss:$8 sps:$4 sm:$0xff]  }
 0x254   :  { %v2152_v19 = vpop.eup %2151  ;;  %2171 = vrcp.f32 %v654_v8  ;;  %1011 = vmatpush1.bf16.msra.mxu1 %v708_v9  ;;  %1888 = vmatprep.mubr.msk.bf16.mxu0 %vm1449_vm4, %v2055_v3 }
 0x255   :  { %v2154_v20 = vpop.eup %2153  ;;  %1012 = vmatprep.subr.bf16.mxu1 %v2365_v4 }
 0x256   :  { %v2156_v21 = vpop.eup %2155  ;;  %v710_v22 = vpack.c.bf16 %v2154_v20, %v2150_v18  ;;  %v752_v18 = vpop.permute.xlu0 %751 }
 0x257   :  { %v2158_v23 = vpop.eup %2157  ;;  %v709_v24 = vpack.c.bf16 %v2156_v21, %v2152_v19 }
 0x258   :  { %v2160_v25 = vpop.eup %2159  ;;  %v659_v26 = vadd.f32 1.0, %v2158_v23 }
 0x259   :  { %v2162_v27 = vpop.eup %2161  ;;  %v657_v28 = vadd.f32 1.0, %v2160_v25  ;;  %1013 = vmatpush1.bf16.msra.mxu1 %v709_v24 }
 0x25a   :  { %v2164_v29 = vpop.eup %2163  ;;  %2173 = vrcp.f32 %v659_v26  ;;  %v660_v30 = vadd.f32 1.0, %v2162_v27  ;;  %1014 = vmatprep.subr.bf16.mxu1 %v2365_v4 }
 0x25b   :  { %v2166_v31 = vpop.eup %2165  ;;  %2175 = vrcp.f32 %v657_v28  ;;  %v658_v32 = vadd.f32 1.0, %v2164_v29 }
 0x25c   :  { %v2168_v33 = vpop.eup %2167  ;;  %2177 = vrcp.f32 %v660_v30  ;;  %v762_v30 = vpop.permute.xlu0 %761 }
 0x25d   :  { %v2170_v34 = vpop.eup %2169  ;;  %2179 = vrcp.f32 %v658_v32  ;;  %1015 = vmatpush1.bf16.msra.mxu1 %v710_v22  ;;  %v757_v22 = vpop.permute.xlu1 %756 }
 0x25e   :  { %v2172_v35 = vpop.eup %2171  ;;  %1016 = vmatprep.subr.bf16.mxu1 %v2365_v4  ;;  %v712_v36 = vpack.c.bf16 %v2170_v34, %v2166_v31 }
 0x25f   :  { %v711_v37 = vpack.c.bf16 %v2172_v35, %v2168_v33 }
 0x261   :  { %1017 = vmatpush1.bf16.msra.mxu1 %v711_v37  ;;  %v767_v35 = vpop.permute.xlu1 %766 }
 0x262   :  { %1018 = vmatprep.subr.bf16.mxu1 %v2365_v4 }
 0x264   :  { %v2174_v38 = vpop.eup %2173 }
 0x265   :  { %v2176_v39 = vpop.eup %2175  ;;  %1019 = vmatpush1.bf16.msra.mxu1 %v712_v36 }
 0x266   :  { %v2178_v40 = vpop.eup %2177  ;;  %1020 = vmatprep.subr.bf16.mxu1 %v2365_v4 }
 0x267   :  { %v2180_v41 = vpop.eup %2179  ;;  %v714_v42 = vpack.c.bf16 %v2178_v40, %v2174_v38 }
 0x268   :  { %v713_v43 = vpack.c.bf16 %v2180_v41, %v2176_v39 }
 0x26a   :  { %1021 = vmatpush1.bf16.msra.mxu1 %v713_v43 }
 0x26b   :  { %1022 = vmatprep.subr.bf16.mxu1 %v2365_v4 }
 0x26e   :  { %1023 = vmatpush1.bf16.msra.mxu1 %v714_v42 }
 0x26f   :  { %1974 = vmatprep.subr.bf16.mxu1 %v2365_v4 }
 0x271   :  { %1037 = vmatmul.mubr.bf16.vlgmr.msra.gmra.mrb[20].mxu1 %v2017_v44 }
 0x272   :  { %1861 = vmatprep.mubr.msk.bf16.mxu1 %vm967_vm3, %v2020_v45 }
 0x279   :  { %1045 = vmatmul.mubr.bf16.gmra.mrb[24].mxu1 %v2022_v46  ;;  %v772_v46 = vpop.permute.xlu0 %771 }
 0x27a   :  { %1862 = vmatprep.mubr.msk.bf16.mxu1 %vm967_vm3, %v2023_v47 }
 0x281   :  { %1053 = vmatmul.mubr.bf16.gmra.mrb[28].mxu1 %v2025_v48 }
 0x282   :  { %1863 = vmatprep.mubr.msk.bf16.mxu1 %vm967_vm3, %v2026_v49 }
 0x289   :  { %1061 = vmatmul.mubr.bf16.gmra.mrb[32].mxu1 %v2028_v50 }
 0x28a   :  { %1864 = vmatprep.mubr.msk.bf16.mxu1 %vm967_vm3, %v2029_v51  ;;  %v777_v51 = vpop.permute.xlu1 %776 }
 0x291   :  { %1069 = vmatmul.mubr.bf16.gmra.mrb[36].mxu1 %v2031_v52 }
 0x292   :  { %1865 = vmatprep.mubr.msk.bf16.mxu1 %vm967_vm3, %v2032_v53 }
 0x299   :  { %1077 = vmatmul.mubr.bf16.gmra.mrb[40].mxu1 %v2034_v54 }
 0x29a   :  { %1866 = vmatprep.mubr.msk.bf16.mxu1 %vm967_vm3, %v2035_v55 }
 0x2a1   :  { %1085 = vmatmul.mubr.bf16.gmra.mrb[44].mxu1 %v2037_v56 }
 0x2a2   :  { %1867 = vmatprep.mubr.msk.bf16.mxu1 %vm967_vm3, %v2038_v57 }
 0x2a9   :  { %1093 = vmatmul.mubr.bf16.gmra.mrb[48].mxu1 %v2040_v58 }
 0x2aa   :  { %1868 = vmatprep.mubr.msk.bf16.mxu1 %vm967_vm3, %v2041_v59 }
 0x2b1   :  { %1101 = vmatmul.mubr.bf16.gmra.mrb[52].mxu1 %v2043_v60 }
 0x2b2   :  { %1869 = vmatprep.mubr.msk.bf16.mxu1 %vm967_vm3, %v2044_v61 }
 0x2b9   :  { %1109 = vmatmul.mubr.bf16.gmra.mrb[56].mxu1 %v2046_v62 }
 0x2ba   :  { %1870 = vmatprep.mubr.msk.bf16.mxu1 %vm967_vm3, %v2047_v63 }
 0x2c1   :  { %1117 = vmatmul.mubr.bf16.gmra.mrb[60].mxu1 %v2049_v0  ;;  %v782_v0 = vpop.permute.xlu0 %781 }
 0x2c2   :  { %1871 = vmatprep.mubr.msk.bf16.mxu1 %vm967_vm3, %v2050_v1 }
 0x2c9   :  { %1125 = vmatmul.mubr.bf16.gmra.mrb[64].mxu1 %v2052_v2 }
 0x2ca   :  { %1895 = vmatprep.mubr.msk.bf16.mxu1 %vm1449_vm4, %v2058_v5 }
 0x344   :  { %v1038_v7 = vpop.f32.mrb[20].mxu1 }
 0x345   :  { %v1039_v9 = vadd.f32 %v1038_v7, %v742_v6  ;;  %v1040_v10 = vpop.f32.mrb[21].mxu1  ;;  %v787_v7 = vpop.permute.xlu1 %786 }
 0x346   :  { %v1041_v12 = vpop.f32.mrb[22].mxu1 }
 0x347   :  { %v1133_v13 = vsub.f32 0.0, %v1039_v9  ;;  %v1042_v14 = vadd.f32 %v1041_v12, %v747_v11  ;;  %v1043_v15 = vpop.f32.mrb[23].mxu1 }
 0x349   :  { %v1157_v16 = vmul.f32 1.442695, %v1133_v13  ;;  %v1134_v17 = vsub.f32 0.0, %v1042_v14 }
 0x34b   :  { %2181 = vpow2.f32 %v1157_v16  ;;  %v1159_v8 = vmul.f32 1.442695, %v1134_v17 }
 0x34c   :  { %v1046_v19 = vpop.f32.mrb[24].mxu1 }
 0x34d   :  { %2183 = vpow2.f32 %v1159_v8  ;;  %v1047_v20 = vadd.f32 %v1046_v19, %v752_v18  ;;  %v1048_v21 = vpop.f32.mrb[25].mxu1 }
 0x34e   :  { %v1049_v23 = vpop.f32.mrb[26].mxu1 }
 0x34f   :  { %v1135_v24 = vsub.f32 0.0, %v1047_v20  ;;  %v1050_v25 = vadd.f32 %v1049_v23, %v757_v22  ;;  %v1051_v26 = vpop.f32.mrb[27].mxu1  ;;  %v792_v20 = vpop.permute.xlu0 %791 }
 0x350   :  { %v797_v26 = vpop.permute.xlu1 %796 }
 0x351   :  { %v1161_v27 = vmul.f32 1.442695, %v1135_v24  ;;  %v1136_v28 = vsub.f32 0.0, %v1050_v25 }
 0x353   :  { %2185 = vpow2.f32 %v1161_v27  ;;  %v1163_v29 = vmul.f32 1.442695, %v1136_v28 }
 0x354   :  { %v1054_v31 = vpop.f32.mrb[28].mxu1 }
 0x355   :  { %v2182_v32 = vpop.eup %2181  ;;  %2187 = vpow2.f32 %v1163_v29  ;;  %v1055_v33 = vadd.f32 %v1054_v31, %v762_v30  ;;  %v1056_v34 = vpop.f32.mrb[29].mxu1 }
 0x356   :  { %v1205_v36 = vadd.f32 1.0, %v2182_v32  ;;  %v1057_v37 = vpop.f32.mrb[30].mxu1 }
 0x357   :  { %v2184_v38 = vpop.eup %2183  ;;  %v1137_v39 = vsub.f32 0.0, %v1055_v33  ;;  %v1058_v40 = vadd.f32 %v1057_v37, %v767_v35  ;;  %v1059_v41 = vpop.f32.mrb[31].mxu1 }
 0x358   :  { %v1206_v42 = vadd.f32 1.0, %v2184_v38  ;;  %2189 = vrcp.f32 %v1205_v36 }
 0x359   :  { %v1165_v43 = vmul.f32 1.442695, %v1137_v39  ;;  %v1138_v44 = vsub.f32 0.0, %v1058_v40  ;;  %v802_v39 = vpop.permute.xlu0 %801 }
 0x35a   :  { %2191 = vrcp.f32 %v1206_v42 }
 0x35b   :  { %2193 = vpow2.f32 %v1165_v43  ;;  %v1167_v45 = vmul.f32 1.442695, %v1138_v44 }
 0x35c   :  { %v1062_v47 = vpop.f32.mrb[32].mxu1 }
 0x35d   :  { %v2186_v48 = vpop.eup %2185  ;;  %2195 = vpow2.f32 %v1167_v45  ;;  %v1063_v49 = vadd.f32 %v1062_v47, %v772_v46  ;;  %v1064_v50 = vpop.f32.mrb[33].mxu1 }
 0x35e   :  { %v1207_v52 = vadd.f32 1.0, %v2186_v48  ;;  %v1065_v53 = vpop.f32.mrb[34].mxu1  ;;  %v807_v45 = vpop.permute.xlu1 %806 }
 0x35f   :  { %v2188_v54 = vpop.eup %2187  ;;  %v1139_v55 = vsub.f32 0.0, %v1063_v49  ;;  %v1066_v56 = vadd.f32 %v1065_v53, %v777_v51  ;;  %v1067_v57 = vpop.f32.mrb[35].mxu1 }
 0x360   :  { %v1208_v58 = vadd.f32 1.0, %v2188_v54  ;;  %2197 = vrcp.f32 %v1207_v52 }
 0x361   :  { %v1169_v59 = vmul.f32 1.442695, %v1139_v55  ;;  %v1140_v60 = vsub.f32 0.0, %v1066_v56 }
 0x362   :  { %2199 = vrcp.f32 %v1208_v58  ;;  %v2190_v61 = vpop.eup %2189  ;;  %v812_v58 = vpop.permute.xlu0 %811 }
 0x363   :  { %2201 = vpow2.f32 %v1169_v59  ;;  %v1171_v62 = vmul.f32 1.442695, %v1140_v60 }
 0x364   :  { %v2192_v63 = vpop.eup %2191  ;;  %v1070_v1 = vpop.f32.mrb[36].mxu1 }
 0x365   :  { %v2194_v2 = vpop.eup %2193  ;;  %2203 = vpow2.f32 %v1171_v62  ;;  %v1071_v3 = vadd.f32 %v1070_v1, %v782_v0  ;;  %v1072_v5 = vpop.f32.mrb[37].mxu1  ;;  %v1269_v6 = vpack.c.bf16 %v2192_v63, %v2190_v61 }
 0x366   :  { %v1209_v9 = vadd.f32 1.0, %v2194_v2  ;;  %v1073_v10 = vpop.f32.mrb[38].mxu1  ;;  %v817_v0 = vpop.permute.xlu1 %816 }
 0x367   :  { %v2196_v11 = vpop.eup %2195  ;;  %v1141_v12 = vsub.f32 0.0, %v1071_v3  ;;  %v1074_v13 = vadd.f32 %v1073_v10, %v787_v7  ;;  %v1075_v14 = vpop.f32.mrb[39].mxu1  ;;  %1475 = vmatpush1.bf16.msra.mxu0 %v1269_v6  ;;  %1986 = vmatpush1.bf16.msra.mxu1 %v1269_v6 }
 0x368   :  { %v1210_v15 = vadd.f32 1.0, %v2196_v11  ;;  %1476 = vmatprep.subr.bf16.mxu0 %v2365_v4  ;;  %1975 = vmatprep.subr.bf16.mxu1 %v2365_v4  ;;  %2205 = vrcp.f32 %v1209_v9 }
 0x369   :  { %v1173_v16 = vmul.f32 1.442695, %v1141_v12  ;;  %v1142_v17 = vsub.f32 0.0, %v1074_v13 }
 0x36a   :  { %2207 = vrcp.f32 %v1210_v15  ;;  %v2198_v8 = vpop.eup %2197  ;;  %v822_v15 = vpop.permute.xlu0 %821 }
 0x36b   :  { %2209 = vpow2.f32 %v1173_v16  ;;  %v1175_v18 = vmul.f32 1.442695, %v1142_v17 }
 0x36c   :  { %v2200_v19 = vpop.eup %2199  ;;  %v1078_v21 = vpop.f32.mrb[40].mxu1 }
 0x36d   :  { %v2202_v22 = vpop.eup %2201  ;;  %2211 = vpow2.f32 %v1175_v18  ;;  %v1079_v23 = vadd.f32 %v1078_v21, %v792_v20  ;;  %v1080_v24 = vpop.f32.mrb[41].mxu1  ;;  %v1270_v25 = vpack.c.bf16 %v2200_v19, %v2198_v8 }
 0x36e   :  { %v1211_v27 = vadd.f32 1.0, %v2202_v22  ;;  %v1081_v28 = vpop.f32.mrb[42].mxu1  ;;  %v827_v20 = vpop.permute.xlu1 %826 }
 0x36f   :  { %v2204_v29 = vpop.eup %2203  ;;  %v1143_v30 = vsub.f32 0.0, %v1079_v23  ;;  %v1082_v31 = vadd.f32 %v1081_v28, %v797_v26  ;;  %v1083_v32 = vpop.f32.mrb[43].mxu1  ;;  %1477 = vmatpush1.bf16.msra.mxu0 %v1270_v25  ;;  %1987 = vmatpush1.bf16.msra.mxu1 %v1270_v25 }
 0x370   :  { %v1212_v33 = vadd.f32 1.0, %v2204_v29  ;;  %1478 = vmatprep.subr.bf16.mxu0 %v2365_v4  ;;  %1976 = vmatprep.subr.bf16.mxu1 %v2365_v4  ;;  %2213 = vrcp.f32 %v1211_v27 }
 0x371   :  { %v1177_v34 = vmul.f32 1.442695, %v1143_v30  ;;  %v1144_v35 = vsub.f32 0.0, %v1082_v31 }
 0x372   :  { %2215 = vrcp.f32 %v1212_v33  ;;  %v2206_v36 = vpop.eup %2205  ;;  %v832_v33 = vpop.permute.xlu0 %831 }
 0x373   :  { %2217 = vpow2.f32 %v1177_v34  ;;  %v1179_v37 = vmul.f32 1.442695, %v1144_v35 }
 0x374   :  { %v2208_v38 = vpop.eup %2207  ;;  %v1086_v40 = vpop.f32.mrb[44].mxu1 }
 0x375   :  { %v2210_v41 = vpop.eup %2209  ;;  %2219 = vpow2.f32 %v1179_v37  ;;  %v1087_v42 = vadd.f32 %v1086_v40, %v802_v39  ;;  %v1088_v43 = vpop.f32.mrb[45].mxu1  ;;  %v1271_v44 = vpack.c.bf16 %v2208_v38, %v2206_v36 }
 0x376   :  { %v1213_v46 = vadd.f32 1.0, %v2210_v41  ;;  %v1089_v47 = vpop.f32.mrb[46].mxu1  ;;  %v837_v39 = vpop.permute.xlu1 %836 }
 0x377   :  { %v2212_v48 = vpop.eup %2211  ;;  %v1145_v49 = vsub.f32 0.0, %v1087_v42  ;;  %v1090_v50 = vadd.f32 %v1089_v47, %v807_v45  ;;  %v1091_v51 = vpop.f32.mrb[47].mxu1  ;;  %1479 = vmatpush1.bf16.msra.mxu0 %v1271_v44  ;;  %1988 = vmatpush1.bf16.msra.mxu1 %v1271_v44 }
 0x378   :  { %v1214_v52 = vadd.f32 1.0, %v2212_v48  ;;  %1480 = vmatprep.subr.bf16.mxu0 %v2365_v4  ;;  %1977 = vmatprep.subr.bf16.mxu1 %v2365_v4  ;;  %2221 = vrcp.f32 %v1213_v46 }
 0x379   :  { %v1181_v53 = vmul.f32 1.442695, %v1145_v49  ;;  %v1146_v54 = vsub.f32 0.0, %v1090_v50 }
 0x37a   :  { %2223 = vrcp.f32 %v1214_v52  ;;  %v2214_v55 = vpop.eup %2213  ;;  %v842_v52 = vpop.permute.xlu0 %841 }
 0x37b   :  { %2225 = vpow2.f32 %v1181_v53  ;;  %v1183_v56 = vmul.f32 1.442695, %v1146_v54 }
 0x37c   :  { %v2216_v57 = vpop.eup %2215  ;;  %v1094_v59 = vpop.f32.mrb[48].mxu1 }
 0x37d   :  { %v2218_v60 = vpop.eup %2217  ;;  %2227 = vpow2.f32 %v1183_v56  ;;  %v1095_v61 = vadd.f32 %v1094_v59, %v812_v58  ;;  %v1096_v62 = vpop.f32.mrb[49].mxu1  ;;  %v1272_v63 = vpack.c.bf16 %v2216_v57, %v2214_v55 }
 0x37e   :  { %v1215_v1 = vadd.f32 1.0, %v2218_v60  ;;  %v1097_v2 = vpop.f32.mrb[50].mxu1  ;;  %v847_v58 = vpop.permute.xlu1 %846 }
 0x37f   :  { %v2220_v3 = vpop.eup %2219  ;;  %v1147_v5 = vsub.f32 0.0, %v1095_v61  ;;  %v1098_v6 = vadd.f32 %v1097_v2, %v817_v0  ;;  %v1099_v7 = vpop.f32.mrb[51].mxu1  ;;  %1481 = vmatpush1.bf16.msra.mxu0 %v1272_v63  ;;  %1989 = vmatpush1.bf16.msra.mxu1 %v1272_v63 }
 0x380   :  { %v1216_v9 = vadd.f32 1.0, %v2220_v3  ;;  %1482 = vmatprep.subr.bf16.mxu0 %v2365_v4  ;;  %1978 = vmatprep.subr.bf16.mxu1 %v2365_v4  ;;  %2229 = vrcp.f32 %v1215_v1 }
 0x381   :  { %v1185_v10 = vmul.f32 1.442695, %v1147_v5  ;;  %v1148_v11 = vsub.f32 0.0, %v1098_v6 }
 0x382   :  { %2231 = vrcp.f32 %v1216_v9  ;;  %v2222_v12 = vpop.eup %2221  ;;  %v852_v9 = vpop.permute.xlu0 %851 }
 0x383   :  { %2233 = vpow2.f32 %v1185_v10  ;;  %v1187_v13 = vmul.f32 1.442695, %v1148_v11 }
 0x384   :  { %v2224_v14 = vpop.eup %2223  ;;  %v1102_v16 = vpop.f32.mrb[52].mxu1 }
 0x385   :  { %v2226_v17 = vpop.eup %2225  ;;  %2235 = vpow2.f32 %v1187_v13  ;;  %v1103_v8 = vadd.f32 %v1102_v16, %v822_v15  ;;  %v1104_v18 = vpop.f32.mrb[53].mxu1  ;;  %v1273_v19 = vpack.c.bf16 %v2224_v14, %v2222_v12 }
 0x386   :  { %v1217_v21 = vadd.f32 1.0, %v2226_v17  ;;  %v1105_v22 = vpop.f32.mrb[54].mxu1  ;;  %v857_v15 = vpop.permute.xlu1 %856 }
 0x387   :  { %v2228_v23 = vpop.eup %2227  ;;  %v1149_v24 = vsub.f32 0.0, %v1103_v8  ;;  %v1106_v25 = vadd.f32 %v1105_v22, %v827_v20  ;;  %v1107_v26 = vpop.f32.mrb[55].mxu1  ;;  %1483 = vmatpush1.bf16.msra.mxu0 %v1273_v19  ;;  %1990 = vmatpush1.bf16.msra.mxu1 %v1273_v19 }
 0x388   :  { %v1218_v27 = vadd.f32 1.0, %v2228_v23  ;;  %1484 = vmatprep.subr.bf16.mxu0 %v2365_v4  ;;  %1979 = vmatprep.subr.bf16.mxu1 %v2365_v4  ;;  %2237 = vrcp.f32 %v1217_v21 }
 0x389   :  { %v1189_v28 = vmul.f32 1.442695, %v1149_v24  ;;  %v1150_v29 = vsub.f32 0.0, %v1106_v25 }
 0x38a   :  { %2239 = vrcp.f32 %v1218_v27  ;;  %v2230_v30 = vpop.eup %2229 }
 0x38b   :  { %2241 = vpow2.f32 %v1189_v28  ;;  %v1191_v31 = vmul.f32 1.442695, %v1150_v29 }
 0x38c   :  { %v2232_v32 = vpop.eup %2231  ;;  %v1110_v34 = vpop.f32.mrb[56].mxu1 }
 0x38d   :  { %v2234_v35 = vpop.eup %2233  ;;  %2243 = vpow2.f32 %v1191_v31  ;;  %v1111_v36 = vadd.f32 %v1110_v34, %v832_v33  ;;  %v1112_v37 = vpop.f32.mrb[57].mxu1  ;;  %v1274_v38 = vpack.c.bf16 %v2232_v32, %v2230_v30 }
 0x38e   :  { %v1219_v40 = vadd.f32 1.0, %v2234_v35  ;;  %v1113_v41 = vpop.f32.mrb[58].mxu1 }
 0x38f   :  { %v2236_v42 = vpop.eup %2235  ;;  %v1151_v43 = vsub.f32 0.0, %v1111_v36  ;;  %v1114_v44 = vadd.f32 %v1113_v41, %v837_v39  ;;  %v1115_v45 = vpop.f32.mrb[59].mxu1  ;;  %1485 = vmatpush1.bf16.msra.mxu0 %v1274_v38  ;;  %1991 = vmatpush1.bf16.msra.mxu1 %v1274_v38 }
 0x390   :  { %v1220_v46 = vadd.f32 1.0, %v2236_v42  ;;  %1486 = vmatprep.subr.bf16.mxu0 %v2365_v4  ;;  %1980 = vmatprep.subr.bf16.mxu1 %v2365_v4  ;;  %2245 = vrcp.f32 %v1219_v40  ;;  %v2053_v45 = vld [vmem:[%s3022_s7] ss:$8 sps:$4 sm:$0xff]  }
 0x391   :  { %v1193_v47 = vmul.f32 1.442695, %v1151_v43  ;;  %v1152_v48 = vsub.f32 0.0, %v1114_v44 }
 0x392   :  { %2247 = vrcp.f32 %v1220_v46  ;;  %v2238_v49 = vpop.eup %2237  ;;  %v2056_v46 = vld [vmem:[%s3022_s7 + $0x70] ss:$8 sps:$4 sm:$0xff]  }
 0x393   :  { %2249 = vpow2.f32 %v1193_v47  ;;  %v1195_v50 = vmul.f32 1.442695, %v1152_v48  ;;  %v2059_v47 = vld [vmem:[%s3022_s7 + $0x14] ss:$8 sps:$4 sm:$0xff]   ;;  %v2062_v48 = vld [vmem:[%s3022_s7 + $0x24] ss:$8 sps:$4 sm:$0xff]  }
 0x394   :  { %v2240_v51 = vpop.eup %2239  ;;  %v1118_v53 = vpop.f32.mrb[60].mxu1 }
 0x395   :  { %v2242_v54 = vpop.eup %2241  ;;  %2251 = vpow2.f32 %v1195_v50  ;;  %v1119_v55 = vadd.f32 %v1118_v53, %v842_v52  ;;  %v1120_v56 = vpop.f32.mrb[61].mxu1  ;;  %v1275_v57 = vpack.c.bf16 %v2240_v51, %v2238_v49  ;;  %v2064_v49 = vld [vmem:[%s3022_s7 + $0x20] ss:$8 sps:$4 sm:$0xff]   ;;  %v2065_v50 = vld [vmem:[%s3022_s7 + $0x34] ss:$8 sps:$4 sm:$0xff]  }
 0x396   :  { %v1221_v59 = vadd.f32 1.0, %v2242_v54  ;;  %v1121_v60 = vpop.f32.mrb[62].mxu1  ;;  %v2067_v51 = vld [vmem:[%s3022_s7 + $0x30] ss:$8 sps:$4 sm:$0xff]   ;;  %v2068_v52 = vld [vmem:[%s3022_s7 + $0x44] ss:$8 sps:$4 sm:$0xff]  }
 0x397   :  { %v2244_v61 = vpop.eup %2243  ;;  %v1153_v62 = vsub.f32 0.0, %v1119_v55  ;;  %v1122_v63 = vadd.f32 %v1121_v60, %v847_v58  ;;  %v1123_v0 = vpop.f32.mrb[63].mxu1  ;;  %1487 = vmatpush1.bf16.msra.mxu0 %v1275_v57  ;;  %1992 = vmatpush1.bf16.msra.mxu1 %v1275_v57  ;;  %v2070_v53 = vld [vmem:[%s3022_s7 + $0x40] ss:$8 sps:$4 sm:$0xff]   ;;  %v2071_v54 = vld [vmem:[%s3022_s7 + $0x54] ss:$8 sps:$4 sm:$0xff]  }
 0x398   :  { %v1222_v1 = vadd.f32 1.0, %v2244_v61  ;;  %1488 = vmatprep.subr.bf16.mxu0 %v2365_v4  ;;  %1981 = vmatprep.subr.bf16.mxu1 %v2365_v4  ;;  %2253 = vrcp.f32 %v1221_v59  ;;  %v2073_v55 = vld [vmem:[%s3022_s7 + $0x50] ss:$8 sps:$4 sm:$0xff]   ;;  %v2074_v56 = vld [vmem:[%s3022_s7 + $0x64] ss:$8 sps:$4 sm:$0xff]   ;;  %v1305_v58 = vpop.permute.xlu1 %1304  ;;  %v1300_v59 = vpop.permute.xlu0 %1299 }
 0x399   :  { %v1197_v2 = vmul.f32 1.442695, %v1153_v62  ;;  %v1154_v3 = vsub.f32 0.0, %v1122_v63  ;;  %v2076_v57 = vld [vmem:[%s3022_s7 + $0x60] ss:$8 sps:$4 sm:$0xff]  }
 0x39a   :  { %2255 = vrcp.f32 %v1222_v1  ;;  %v2246_v5 = vpop.eup %2245 }
 0x39b   :  { %2257 = vpow2.f32 %v1197_v2  ;;  %v1199_v6 = vmul.f32 1.442695, %v1154_v3 }
 0x39c   :  { %v2248_v7 = vpop.eup %2247  ;;  %v1126_v10 = vpop.f32.mrb[64].mxu1 }
 0x39d   :  { %v2250_v11 = vpop.eup %2249  ;;  %2259 = vpow2.f32 %v1199_v6  ;;  %v1127_v12 = vadd.f32 %v1126_v10, %v852_v9  ;;  %v1128_v13 = vpop.f32.mrb[65].mxu1  ;;  %v1276_v14 = vpack.c.bf16 %v2248_v7, %v2246_v5 }
 0x39e   :  { %v1223_v16 = vadd.f32 1.0, %v2250_v11  ;;  %v1129_v17 = vpop.f32.mrb[66].mxu1  ;;  %v1315_v60 = vpop.permute.xlu1 %1314 }
 0x39f   :  { %v2252_v8 = vpop.eup %2251  ;;  %v1155_v18 = vsub.f32 0.0, %v1127_v12  ;;  %v1130_v19 = vadd.f32 %v1129_v17, %v857_v15  ;;  %v1131_v20 = vpop.f32.mrb[67].mxu1  ;;  %1489 = vmatpush1.bf16.msra.mxu0 %v1276_v14  ;;  %1993 = vmatpush1.bf16.msra.mxu1 %v1276_v14 }
 0x3a0   :  { %v1224_v21 = vadd.f32 1.0, %v2252_v8  ;;  %1490 = vmatprep.subr.bf16.mxu0 %v2365_v4  ;;  %1982 = vmatprep.subr.bf16.mxu1 %v2365_v4  ;;  %2261 = vrcp.f32 %v1223_v16  ;;  %v1310_v61 = vpop.permute.xlu0 %1309 }
 0x3a1   :  { %v1201_v22 = vmul.f32 1.442695, %v1155_v18  ;;  %v1156_v23 = vsub.f32 0.0, %v1130_v19 }
 0x3a2   :  { %2263 = vrcp.f32 %v1224_v21  ;;  %v2254_v24 = vpop.eup %2253  ;;  %v1325_v62 = vpop.permute.xlu1 %1324 }
 0x3a3   :  { %2265 = vpow2.f32 %v1201_v22  ;;  %v1203_v25 = vmul.f32 1.442695, %v1156_v23 }
 0x3a4   :  { %v2256_v26 = vpop.eup %2255  ;;  %v1320_v63 = vpop.permute.xlu0 %1319 }
 0x3a5   :  { %v2258_v27 = vpop.eup %2257  ;;  %2267 = vpow2.f32 %v1203_v25  ;;  %v1277_v28 = vpack.c.bf16 %v2256_v26, %v2254_v24 }
 0x3a6   :  { %v1225_v29 = vadd.f32 1.0, %v2258_v27  ;;  %v2976_v0 = vpop.permute.xlu1 %1334 }
 0x3a7   :  { %v2260_v30 = vpop.eup %2259  ;;  %1491 = vmatpush1.bf16.msra.mxu0 %v1277_v28  ;;  %1994 = vmatpush1.bf16.msra.mxu1 %v1277_v28 }
 0x3a8   :  { %v1226_v31 = vadd.f32 1.0, %v2260_v30  ;;  %1492 = vmatprep.subr.bf16.mxu0 %v2365_v4  ;;  %1983 = vmatprep.subr.bf16.mxu1 %v2365_v4  ;;  %2269 = vrcp.f32 %v1225_v29  ;;  %v1330_v1 = vpop.permute.xlu0 %1329 }
 0x3aa   :  { %2271 = vrcp.f32 %v1226_v31  ;;  %v2262_v32 = vpop.eup %2261  ;;  %v2982_v17 = vpop.permute.xlu1 %1344 }
 0x3ac   :  { %v2264_v33 = vpop.eup %2263  ;;  %v2984_v18 = vpop.permute.xlu0 %1339 }
 0x3ad   :  { %v2266_v34 = vpop.eup %2265  ;;  %v1278_v35 = vpack.c.bf16 %v2264_v33, %v2262_v32 }
 0x3ae   :  { %v1227_v36 = vadd.f32 1.0, %v2266_v34  ;;  %v2986_v26 = vpop.permute.xlu1 %1354 }
 0x3af   :  { %v2268_v37 = vpop.eup %2267  ;;  %1493 = vmatpush1.bf16.msra.mxu0 %v1278_v35  ;;  %1995 = vmatpush1.bf16.msra.mxu1 %v1278_v35 }
 0x3b0   :  { %v1228_v38 = vadd.f32 1.0, %v2268_v37  ;;  %1494 = vmatprep.subr.bf16.mxu0 %v2365_v4  ;;  %1984 = vmatprep.subr.bf16.mxu1 %v2365_v4  ;;  %2273 = vrcp.f32 %v1227_v36  ;;  %v2988_v29 = vpop.permute.xlu0 %1349 }
 0x3b2   :  { %2275 = vrcp.f32 %v1228_v38  ;;  %v2270_v39 = vpop.eup %2269  ;;  %v2990_v38 = vpop.permute.xlu1 %1364 }
 0x3b4   :  { %v2272_v40 = vpop.eup %2271 }
 0x3b5   :  { %v1279_v41 = vpack.c.bf16 %v2272_v40, %v2270_v39 }
 0x3b7   :  { %1495 = vmatpush1.bf16.msra.mxu0 %v1279_v41  ;;  %1996 = vmatpush1.bf16.msra.mxu1 %v1279_v41 }
 0x3b8   :  { %1496 = vmatprep.subr.bf16.mxu0 %v2365_v4  ;;  %1985 = vmatprep.subr.bf16.mxu1 %v2365_v4  ;;  %v2061_v4 = vld [vmem:[%s3022_s7 + $0x10] ss:$8 sps:$4 sm:$0xff]   ;;  %s2368_s7 = smov [#allocation3]  }
 0x3b9   :  { %s1802_s0 = sshll.u32 %s2368_s7, 4  ;;  %s1803_s0 = int_to_ptr.vmem [resolvable:$true] %s1802_s0 }
 0x3ba   :  { %v2274_v42 = vpop.eup %2273  ;;  %s2341_s5 = scalar_lea.vmem %s1803_s0, 16  ;;  %s2345_s10 = scalar_lea.vmem %s1803_s0, 32 }
 0x3bb   :  { %p2342_p0 = scmp.ne.s32.totalorder %s1803_s0, %s2341_s5  ;;  %p2346_p1 = scmp.lt.s32.totalorder %s1803_s0, %s1803_s0 }
 0x3bc   :  { %v2276_v43 = vpop.eup %2275  ;;  %p2347_p2 = scmp.lt.s32.totalorder %s2345_s10, %s2341_s5 }
 0x3bd   :  { %v1280_v44 = vpack.c.bf16 %v2276_v43, %v2274_v42  ;;  %v2992_v42 = vpop.permute.xlu0 %1359 }
 0x3be   :  { %p2348_p3 = por %p2347_p2, %p2346_p1 }
 0x3bf   :  { %1497 = vmatpush1.bf16.msra.mxu0 %v1280_v44  ;;  %1997 = vmatpush1.bf16.msra.mxu1 %v1280_v44 }
 0x3c0   :  { %p2349_p4 = pnand %p2348_p3, %p2342_p0 }
 0x3c2   :  { %1507 = vmatmul.mubr.bf16.vlgmr.msra.gmra.mrb[12].mxu0 %v2053_v45  ;;  %1563 = vmatmul.mubr.bf16.vlgmr.msra.gmra.mrb[68].mxu1 %v2056_v46 }
 0x3c3   :  { %1889 = vmatprep.mubr.msk.bf16.mxu0 %vm1449_vm4, %v2059_v47 }
 0x3ca   :  { %1515 = vmatmul.mubr.bf16.gmra.mrb[16].mxu0 %v2061_v4 }
 0x3cb   :  { %1890 = vmatprep.mubr.msk.bf16.mxu0 %vm1449_vm4, %v2062_v48  ;;  %v1375_v48 = vpop.permute.xlu1 %1374 }
 0x3d2   :  { %1523 = vmatmul.mubr.bf16.gmra.mrb[20].mxu0 %v2064_v49 }
 0x3d3   :  { %1891 = vmatprep.mubr.msk.bf16.mxu0 %vm1449_vm4, %v2065_v50 }
 0x3da   :  { %1531 = vmatmul.mubr.bf16.gmra.mrb[24].mxu0 %v2067_v51  ;;  %v1370_v51 = vpop.permute.xlu0 %1369 }
 0x3db   :  { %1892 = vmatprep.mubr.msk.bf16.mxu0 %vm1449_vm4, %v2068_v52 }
 0x3e2   :  { %1539 = vmatmul.mubr.bf16.gmra.mrb[28].mxu0 %v2070_v53 }
 0x3e3   :  { %1893 = vmatprep.mubr.msk.bf16.mxu0 %vm1449_vm4, %v2071_v54 }
 0x3ea   :  { %1547 = vmatmul.mubr.bf16.gmra.mrb[32].mxu0 %v2073_v55 }
 0x3eb   :  { %1894 = vmatprep.mubr.msk.bf16.mxu0 %vm1449_vm4, %v2074_v56 }
 0x3f2   :  { %1555 = vmatmul.mubr.bf16.gmra.mrb[36].mxu0 %v2076_v57 }
 0x495   :  { %v1508_v2 = vpop.f32.mrb[12].mxu0  ;;  %v2978_v3 = vpop.f32.mrb[68].mxu1 }
 0x496   :  { %v1509_v5 = vadd.f32 %v1508_v2, %v1300_v59  ;;  %v1510_v6 = vpop.f32.mrb[13].mxu0  ;;  %v1566_v7 = vpop.f32.mrb[69].mxu1 }
 0x497   :  { %v1511_v9 = vpop.f32.mrb[14].mxu0  ;;  %v2980_v10 = vpop.f32.mrb[70].mxu1 }
 0x498   :  { %v1571_v11 = vsub.f32 0.0, %v1509_v5  ;;  %v1512_v12 = vadd.f32 %v1511_v9, %v1305_v58  ;;  %v1513_v13 = vpop.f32.mrb[15].mxu0  ;;  %v1569_v14 = vpop.f32.mrb[71].mxu1 }
 0x49a   :  { %v1587_v15 = vmul.f32 1.442695, %v1571_v11  ;;  %v1572_v16 = vsub.f32 0.0, %v1512_v12 }
 0x49c   :  { %2277 = vpow2.f32 %v1587_v15  ;;  %v1589_v8 = vmul.f32 1.442695, %v1572_v16 }
 0x49d   :  { %v1516_v19 = vpop.f32.mrb[16].mxu0 }
 0x49e   :  { %2279 = vpow2.f32 %v1589_v8  ;;  %v1517_v20 = vadd.f32 %v1516_v19, %v1310_v61  ;;  %v1518_v21 = vpop.f32.mrb[17].mxu0 }
 0x49f   :  { %v1519_v22 = vpop.f32.mrb[18].mxu0 }
 0x4a0   :  { %v1573_v23 = vsub.f32 0.0, %v1517_v20  ;;  %v1520_v24 = vadd.f32 %v1519_v22, %v1315_v60  ;;  %v1521_v25 = vpop.f32.mrb[19].mxu0 }
 0x4a1   :  { %v1565_v25 = vadd.f32 %v2978_v3, %v1370_v51 }
 0x4a2   :  { %v1591_v27 = vmul.f32 1.442695, %v1573_v23  ;;  %v1574_v28 = vsub.f32 0.0, %v1520_v24 }
 0x4a4   :  { %2281 = vpow2.f32 %v1591_v27  ;;  %v1593_v30 = vmul.f32 1.442695, %v1574_v28 }
 0x4a5   :  { %v1524_v31 = vpop.f32.mrb[20].mxu0 }
 0x4a6   :  { %v2278_v32 = vpop.eup %2277  ;;  %2283 = vpow2.f32 %v1593_v30  ;;  %v1525_v33 = vadd.f32 %v1524_v31, %v1320_v63  ;;  %v1526_v34 = vpop.f32.mrb[21].mxu0  ;;  %v1568_v31 = vadd.f32 %v2980_v10, %v1375_v48 }
 0x4a7   :  { %v1619_v35 = vadd.f32 1.0, %v2278_v32  ;;  %v1527_v36 = vpop.f32.mrb[22].mxu0 }
 0x4a8   :  { %v2280_v37 = vpop.eup %2279  ;;  %v1575_v39 = vsub.f32 0.0, %v1525_v33  ;;  %v1528_v40 = vadd.f32 %v1527_v36, %v1325_v62  ;;  %v1529_v41 = vpop.f32.mrb[23].mxu0  ;;  %v1586_v10 = vsub.f32 0.0, %v1568_v31 }
 0x4a9   :  { %2285 = vrcp.f32 %v1619_v35  ;;  %v1620_v43 = vadd.f32 1.0, %v2280_v37  ;;  %v1675_v62 = vpop.permute.xlu1 %1674  ;;  %v1585_v41 = vsub.f32 0.0, %v1565_v25 }
 0x4aa   :  { %v1595_v44 = vmul.f32 1.442695, %v1575_v39  ;;  %v1576_v45 = vsub.f32 0.0, %v1528_v40 }
 0x4ab   :  { %2287 = vrcp.f32 %v1620_v43 }
 0x4ac   :  { %v1597_v46 = vmul.f32 1.442695, %v1576_v45  ;;  %2289 = vpow2.f32 %v1595_v44 }
 0x4ad   :  { %v1532_v47 = vpop.f32.mrb[24].mxu0  ;;  %v1685_v30 = vpop.permute.xlu1 %1684 }
 0x4ae   :  { %v2282_v4 = vpop.eup %2281  ;;  %2291 = vpow2.f32 %v1597_v46  ;;  %v1533_v49 = vadd.f32 %v1532_v47, %v1330_v1  ;;  %v1534_v50 = vpop.f32.mrb[25].mxu0 }
 0x4af   :  { %v1621_v52 = vadd.f32 1.0, %v2282_v4  ;;  %v1535_v53 = vpop.f32.mrb[26].mxu0  ;;  %v1670_v1 = vpop.permute.xlu0 %1669  ;;  %v1615_v50 = vmul.f32 1.442695, %v1585_v41 }
 0x4b0   :  { %v2284_v54 = vpop.eup %2283  ;;  %v1577_v55 = vsub.f32 0.0, %v1533_v49  ;;  %v1536_v56 = vadd.f32 %v1535_v53, %v2976_v0  ;;  %v1537_v57 = vpop.f32.mrb[27].mxu0 }
 0x4b1   :  { %2293 = vrcp.f32 %v1621_v52  ;;  %v1622_v58 = vadd.f32 1.0, %v2284_v54  ;;  %v1695_v52 = vpop.permute.xlu1 %1694 }
 0x4b2   :  { %v1599_v59 = vmul.f32 1.442695, %v1577_v55  ;;  %v1578_v60 = vsub.f32 0.0, %v1536_v56  ;;  %v1617_v56 = vmul.f32 1.442695, %v1586_v10 }
 0x4b3   :  { %v2286_v61 = vpop.eup %2285  ;;  %2295 = vrcp.f32 %v1622_v58  ;;  %v1680_v24 = vpop.permute.xlu0 %1679 }
 0x4b4   :  { %2297 = vpow2.f32 %v1599_v59  ;;  %v1601_v63 = vmul.f32 1.442695, %v1578_v60  ;;  %v1747_v6 = vmul.f32 %v2286_v61, %v1670_v1 }
 0x4b5   :  { %v2288_v2 = vpop.eup %2287  ;;  %v1540_v5 = vpop.f32.mrb[28].mxu0 }
 0x4b6   :  { %v1748_v7 = vmul.f32 %v2288_v2, %v1675_v62  ;;  %2299 = vpow2.f32 %v1601_v63  ;;  %v1541_v9 = vadd.f32 %v1540_v5, %v2984_v18  ;;  %v1542_v11 = vpop.f32.mrb[29].mxu0  ;;  %v2290_v0 = vpop.eup %2289 }
 0x4b7   :  { %v1543_v12 = vpop.f32.mrb[30].mxu0  ;;  %v1623_v15 = vadd.f32 1.0, %v2290_v0  ;;  %v1690_v49 = vpop.permute.xlu0 %1689 }
 0x4b8   :  { %v2292_v13 = vpop.eup %2291  ;;  %v1763_v14 = vadd.f32 %v1748_v7, %v1747_v6  ;;  %v1579_v16 = vsub.f32 0.0, %v1541_v9  ;;  %v1544_v8 = vadd.f32 %v1543_v12, %v2982_v17  ;;  %v1545_v19 = vpop.f32.mrb[31].mxu0 }
 0x4b9   :  { %v1624_v20 = vadd.f32 1.0, %v2292_v13  ;;  %2301 = vrcp.f32 %v1623_v15 }
 0x4ba   :  { %v1603_v21 = vmul.f32 1.442695, %v1579_v16  ;;  %v1580_v22 = vsub.f32 0.0, %v1544_v8 }
 0x4bb   :  { %v2294_v23 = vpop.eup %2293  ;;  %2303 = vrcp.f32 %v1624_v20  ;;  %v1700_v0 = vpop.permute.xlu0 %1699 }
 0x4bc   :  { %v1749_v18 = vmul.f32 %v2294_v23, %v1680_v24  ;;  %2305 = vpow2.f32 %v1603_v21  ;;  %v1605_v27 = vmul.f32 1.442695, %v1580_v22 }
 0x4bd   :  { %v2296_v28 = vpop.eup %2295  ;;  %v1548_v32 = vpop.f32.mrb[32].mxu0 }
 0x4be   :  { %v2298_v33 = vpop.eup %2297  ;;  %v1764_v17 = vadd.f32 %v1763_v14, %v1749_v18  ;;  %v1750_v34 = vmul.f32 %v2296_v28, %v1685_v30  ;;  %2307 = vpow2.f32 %v1605_v27  ;;  %v1549_v35 = vadd.f32 %v1548_v32, %v2988_v29  ;;  %v1550_v36 = vpop.f32.mrb[33].mxu0 }
 0x4bf   :  { %v1625_v37 = vadd.f32 1.0, %v2298_v33  ;;  %v1551_v39 = vpop.f32.mrb[34].mxu0  ;;  %v1705_v14 = vpop.permute.xlu1 %1704 }
 0x4c0   :  { %v2300_v40 = vpop.eup %2299  ;;  %v1765_v3 = vadd.f32 %v1764_v17, %v1750_v34  ;;  %v1581_v43 = vsub.f32 0.0, %v1549_v35  ;;  %v1552_v44 = vadd.f32 %v1551_v39, %v2986_v26  ;;  %v1553_v45 = vpop.f32.mrb[35].mxu0 }
 0x4c1   :  { %2309 = vrcp.f32 %v1625_v37  ;;  %v1626_v46 = vadd.f32 1.0, %v2300_v40  ;;  %v1710_v24 = vpop.permute.xlu0 %1709 }
 0x4c2   :  { %v1607_v47 = vmul.f32 1.442695, %v1581_v43  ;;  %v1582_v4 = vsub.f32 0.0, %v1552_v44 }
 0x4c3   :  { %2311 = vrcp.f32 %v1626_v46  ;;  %v2302_v48 = vpop.eup %2301  ;;  %v1715_v28 = vpop.permute.xlu1 %1714 }
 0x4c4   :  { %2313 = vpow2.f32 %v1607_v47  ;;  %v1609_v29 = vmul.f32 1.442695, %v1582_v4  ;;  %v1751_v53 = vmul.f32 %v2302_v48, %v1690_v49 }
 0x4c5   :  { %v2304_v51 = vpop.eup %2303  ;;  %v1556_v54 = vpop.f32.mrb[36].mxu0 }
 0x4c6   :  { %v2306_v55 = vpop.eup %2305  ;;  %v1752_v57 = vmul.f32 %v2304_v51, %v1695_v52  ;;  %2315 = vpow2.f32 %v1609_v29  ;;  %v1557_v26 = vadd.f32 %v1556_v54, %v2992_v42  ;;  %v1558_v58 = vpop.f32.mrb[37].mxu0  ;;  %v1766_v59 = vadd.f32 %v1765_v3, %v1751_v53 }
 0x4c7   :  { %v1627_v60 = vadd.f32 1.0, %v2306_v55  ;;  %v1559_v61 = vpop.f32.mrb[38].mxu0  ;;  %2317 = vpow2.f32 %v1615_v50  ;;  %v1720_v40 = vpop.permute.xlu0 %1719  ;;  %v1790_v58 = vlaneseq }
 0x4c8   :  { %v2308_v62 = vpop.eup %2307  ;;  %v1583_v63 = vsub.f32 0.0, %v1557_v26  ;;  %v1560_v2 = vadd.f32 %v1559_v61, %v2990_v38  ;;  %v1561_v1 = vpop.f32.mrb[39].mxu0  ;;  %v1767_v5 = vadd.f32 %v1766_v59, %v1752_v57 }
 0x4c9   :  { %2319 = vrcp.f32 %v1627_v60  ;;  %v1628_v6 = vadd.f32 1.0, %v2308_v62  ;;  %v1725_v43 = vpop.permute.xlu1 %1724  ;;  %v1791_v61 = vshrl.u32 %v1790_v58, 7 }
 0x4ca   :  { %2321 = vpow2.f32 %v1617_v56  ;;  %v1611_v7 = vmul.f32 1.442695, %v1583_v63  ;;  %v1584_v9 = vsub.f32 0.0, %v1560_v2 }
 0x4cb   :  { %v2310_v11 = vpop.eup %2309  ;;  %2323 = vrcp.f32 %v1628_v6  ;;  %v1730_v10 = vpop.permute.xlu0 %1729  ;;  %v1792_v2 = vsub.s32 0, %v1791_v61 }
 0x4cc   :  { %v1753_v42 = vmul.f32 %v2310_v11, %v1700_v0  ;;  %2325 = vpow2.f32 %v1611_v7  ;;  %v1613_v12 = vmul.f32 1.442695, %v1584_v9 }
 0x4cd   :  { %v2312_v13 = vpop.eup %2311  ;;  %v1735_v4 = vpop.permute.xlu1 %1734 }
 0x4ce   :  { %v2314_v15 = vpop.eup %2313  ;;  %v1768_v16 = vadd.f32 %v1767_v5, %v1753_v42  ;;  %v1754_v8 = vmul.f32 %v2312_v13, %v1705_v14  ;;  %2327 = vpow2.f32 %v1613_v12 }
 0x4cf   :  { %v1629_v38 = vadd.f32 1.0, %v2314_v15  ;;  %v1740_v53 = vpop.permute.xlu0 %1739 }
 0x4d0   :  { %v2316_v19 = vpop.eup %2315  ;;  %v1769_v20 = vadd.f32 %v1768_v16, %v1754_v8 }
 0x4d1   :  { %2329 = vrcp.f32 %v1629_v38  ;;  %v1630_v21 = vadd.f32 1.0, %v2316_v19  ;;  %v2318_v22 = vpop.eup %2317  ;;  %v1745_v56 = vpop.permute.xlu1 %1744 }
 0x4d2   :  { %v1633_v31 = vadd.f32 1.0, %v2318_v22 }
 0x4d3   :  { %v2320_v23 = vpop.eup %2319  ;;  %2331 = vrcp.f32 %v1630_v21  ;;  %v1788_v5 = vpop.permute.xlu0 %1787 }
 0x4d4   :  { %v2322_v25 = vpop.eup %2321  ;;  %v1755_v18 = vmul.f32 %v2320_v23, %v1710_v24  ;;  %v1793_v7 = vrot.slane %v1788_v5, %v1792_v2 }
 0x4d5   :  { %v2324_v27 = vpop.eup %2323  ;;  %v1634_v36 = vadd.f32 1.0, %v2322_v25 }
 0x4d6   :  { %v2326_v30 = vpop.eup %2325  ;;  %v1770_v32 = vadd.f32 %v1769_v20, %v1755_v18  ;;  %v1756_v33 = vmul.f32 %v2324_v27, %v1715_v28 }
 0x4d7   :  { %v1631_v17 = vadd.f32 1.0, %v2326_v30 }
 0x4d8   :  { %v2328_v34 = vpop.eup %2327  ;;  %v1771_v35 = vadd.f32 %v1770_v32, %v1756_v33 }
 0x4d9   :  { %2333 = vrcp.f32 %v1631_v17  ;;  %v1632_v37 = vadd.f32 1.0, %v2328_v34 }
 0x4da   :  { %2335 = vrcp.f32 %v1633_v31 }
 0x4db   :  { %v2330_v39 = vpop.eup %2329  ;;  %2337 = vrcp.f32 %v1632_v37 }
 0x4dc   :  { %v1757_v41 = vmul.f32 %v2330_v39, %v1720_v40  ;;  %2339 = vrcp.f32 %v1634_v36 }
 0x4dd   :  { %v2332_v3 = vpop.eup %2331 }
 0x4de   :  { %v1772_v44 = vadd.f32 %v1771_v35, %v1757_v41  ;;  %v1758_v45 = vmul.f32 %v2332_v3, %v1725_v43 }
 0x4e0   :  { %v1773_v46 = vadd.f32 %v1772_v44, %v1758_v45 }
 0x4e3   :  { %v2334_v47 = vpop.eup %2333 }
 0x4e4   :  { %v2336_v48 = vpop.eup %2335  ;;  %v1759_v49 = vmul.f32 %v2334_v47, %v1730_v10 }
 0x4e5   :  { %v2338_v50 = vpop.eup %2337  ;;  %v1761_v54 = vmul.f32 %v2336_v48, %v1740_v53 }
 0x4e6   :  { %v1760_v29 = vmul.f32 %v2338_v50, %v1735_v4  ;;  %v1774_v51 = vadd.f32 %v1773_v46, %v1759_v49  ;;  %v2340_v52 = vpop.eup %2339 }
 0x4e7   :  { %v1762_v57 = vmul.f32 %v2340_v52, %v1745_v56 }
 0x4e8   :  { %v1775_v55 = vadd.f32 %v1774_v51, %v1760_v29 }
 0x4ea   :  { %v1776_v26 = vadd.f32 %v1775_v55, %v1761_v54 }
 0x4ec   :  { %v1777_v59 = vadd.f32 %v1776_v26, %v1762_v57 }
 0x4ee   :  { %v1778_v60 = vrot.slane %v1777_v59, 4 }
 0x4f0   :  { %v1779_v62 = vadd.f32 %v1778_v60, %v1777_v59 }
 0x4f2   :  { %v1780_v63 = vrot.slane %v1779_v62, 2 }
 0x4f4   :  { %v1781_v1 = vadd.f32 %v1780_v63, %v1779_v62 }
 0x4f6   :  { %v1782_v6 = vrot.slane %v1781_v1, 1 }
 0x4f8   :  { %v1783_v9 = vadd.f32 %v1782_v6, %v1781_v1 }
 0x4fa   :  { %v1794_v11 = vadd.f32 %v1793_v7, %v1783_v9 }
 0x4fc   :  { %1795 = vst [vmem:[#allocation3] sm:$0x1] %v1794_v11 }
 0x4fd   :  { %2352 = shalt.err (!%p2349_p4)
}
 0x4fe   :  { %s2353_s28 = scalar_lea.hbm %s3026_s11, 16 }
 0x4ff   :  { %p2354_p5 = scmp.ne.s32.totalorder %s3026_s11, %s2353_s28  ;;  %p2357_p6 = scmp.lt.u32.totalorder %s2353_s28, %s3026_s11 }
 0x501   :  { %p2359_p7 = pnand %p2357_p6, %p2354_p5 }
 0x503   :  { %2362 = shalt.err (!%p2359_p7)
}
 0x504   :  { %1805 = dma.vmem_to_hbm [thread:$0]  %s1803_s0, 16, %s3026_s11, [#allocation4]  }
 0x505   :  { %2363 = dma.done.wait [#allocation4], 16  }
 0x506   :  { %2364 = vsyncadd [#allocation4], 4294967280 }
 0x507   :  { %1809 = vsyncpa [#allocation4], 1 }

</bundles_post_ra>
